<compile_context>
chip_gen: v7x
topology: tpu7x:2x2x1
jax: 0.10.0
libtpu: 0.0.40
codegen_flags: <defaults>
</compile_context>

<pallas_src>
import functools

import jax
import jax.numpy as jnp
from jax.experimental import pallas as pl
from jax.experimental.pallas import tpu as pltpu

EPS = 1e-6


def layernorm_kernel(x_ref, g_ref, b_ref, o_ref, *, inv_c):
    # x_ref: (TR, C) rows to normalize; g_ref/b_ref: (1, C) affine params.
    x = x_ref[...].astype(jnp.float32)

    # Single pass over x: one sweep feeds both cross-lane reductions (XLU).
    s = jnp.sum(x, axis=-1, keepdims=True)
    sq = jnp.sum(x * x, axis=-1, keepdims=True)
    mean = s * inv_c
    var = jnp.maximum(sq * inv_c - mean * mean, 0.0)
    inv = jax.lax.rsqrt(var + EPS)

    g = g_ref[...].astype(jnp.float32)
    b = b_ref[...].astype(jnp.float32)
    # y = (x - mean) * inv * g + b, with (inv * g) folded once per row-block.
    y = (x - mean) * (inv * g) + b
    o_ref[...] = y.astype(o_ref.dtype)


def layernorm_pallas(x, gamma, beta, *, block_rows=512):
    """LayerNorm over the last axis of x (any leading shape), eps=1e-6, affine."""
    orig_shape = x.shape
    C = orig_shape[-1]
    R = 1
    for d in orig_shape[:-1]:
        R *= d
    x2 = x.reshape(R, C)
    g2 = gamma.reshape(1, C)
    b2 = beta.reshape(1, C)

    # Row-tile size: either the full extent (small inputs, single block) or a
    # multiple-of-8 block.  A trailing partial block is fine: statistics are
    # per-row, so out-of-bounds rows never contaminate valid rows, and Pallas
    # masks the partial write-back.
    if R <= block_rows:
        tr = R
    else:
        tr = block_rows  # multiple of 8 sublanes
    grid = (pl.cdiv(R, tr),)

    kernel = functools.partial(layernorm_kernel, inv_c=1.0 / C)

    out = pl.pallas_call(
        kernel,
        out_shape=jax.ShapeDtypeStruct((R, C), x.dtype),
        grid=grid,
        in_specs=[
            pl.BlockSpec((tr, C), lambda i: (i, 0)),
            pl.BlockSpec((1, C), lambda i: (0, 0)),   # gamma: VMEM-resident
            pl.BlockSpec((1, C), lambda i: (0, 0)),   # beta:  VMEM-resident
        ],
        out_specs=pl.BlockSpec((tr, C), lambda i: (i, 0)),
        compiler_params=pltpu.CompilerParams(
            dimension_semantics=("parallel",)
        ),
    )(x2, g2, b2)
    return out.reshape(orig_shape)


if __name__ == "__main__":
    key = jax.random.PRNGKey(0)
    kx, kg, kb = jax.random.split(key, 3)

    # Matches torch.Size([1, 14, 14, 384]) from the module.
    x = jax.random.normal(kx, (1, 14, 14, 384), dtype=jnp.float32)
    # Deterministic synthetic affine params (elementwise_affine=True).
    gamma = 1.0 + 0.1 * jax.random.normal(kg, (384,), dtype=jnp.float32)
    beta = 0.1 * jax.random.normal(kb, (384,), dtype=jnp.float32)

    y = layernorm_pallas(x, gamma, beta)
    jax.block_until_ready(y)

    # Reference check in plain JAX (PyTorch LayerNorm semantics: biased var).
    xf = x.astype(jnp.float32)
    mean = jnp.mean(xf, axis=-1, keepdims=True)
    var = jnp.mean((xf - mean) ** 2, axis=-1, keepdims=True)
    ref = (xf - mean) / jnp.sqrt(var + EPS) * gamma + beta
    assert jnp.allclose(y, ref, atol=1e-5, rtol=1e-5), "mismatch vs reference"

    print("KERNEL_OK")
</pallas_src>

<mosaic_0001>
module attributes {stable_mosaic.version = 11 : i64} {
  func.func @layernorm_kernel(%arg0: i32, %arg1: memref<196x384xf32, #tpu.memory_space<vmem>>, %arg2: memref<1x384xf32, #tpu.memory_space<vmem>>, %arg3: memref<1x384xf32, #tpu.memory_space<vmem>>, %arg4: memref<196x384xf32, #tpu.memory_space<vmem>>) attributes {dimension_semantics = [#tpu.dimension_semantics<parallel>], iteration_bounds = array<i64: 1>, scalar_prefetch = 0 : i64, scratch_operands = 0 : i64, tpu.core_type = #tpu.core_type<tc>, window_params = [{transform_indices = @transform_0, window_bounds = array<i64: 196, 384>}, {pipeline_mode = #tpu.pipeline_mode<synchronous>, transform_indices = @transform_1, window_bounds = array<i64: 1, 384>}, {pipeline_mode = #tpu.pipeline_mode<synchronous>, transform_indices = @transform_2, window_bounds = array<i64: 1, 384>}, {transform_indices = @transform_3, window_bounds = array<i64: 196, 384>}]} {
    %c0 = arith.constant 0 : index
    %c0_0 = arith.constant 0 : index
    %0 = vector.load %arg1[%c0, %c0_0] : memref<196x384xf32, #tpu.memory_space<vmem>>, vector<196x384xf32>
    %cst = arith.constant dense<0.000000e+00> : vector<196xf32>
    %1 = vector.multi_reduction <add>, %0, %cst [1] : vector<196x384xf32> to vector<196xf32>
    %2 = vector.shape_cast %1 : vector<196xf32> to vector<196x1xf32>
    %3 = arith.mulf %0, %0 : vector<196x384xf32>
    %cst_1 = arith.constant dense<0.000000e+00> : vector<196xf32>
    %4 = vector.multi_reduction <add>, %3, %cst_1 [1] : vector<196x384xf32> to vector<196xf32>
    %5 = vector.shape_cast %4 : vector<196xf32> to vector<196x1xf32>
    %cst_2 = arith.constant 0.00260416674 : f32
    %6 = vector.broadcast %cst_2 : f32 to vector<196x1xf32>
    %7 = arith.mulf %2, %6 : vector<196x1xf32>
    %cst_3 = arith.constant 0.00260416674 : f32
    %8 = vector.broadcast %cst_3 : f32 to vector<196x1xf32>
    %9 = arith.mulf %5, %8 : vector<196x1xf32>
    %10 = arith.mulf %7, %7 : vector<196x1xf32>
    %11 = arith.subf %9, %10 : vector<196x1xf32>
    %cst_4 = arith.constant 0.000000e+00 : f32
    %12 = vector.broadcast %cst_4 : f32 to vector<196x1xf32>
    %13 = arith.maximumf %11, %12 : vector<196x1xf32>
    %cst_5 = arith.constant 9.99999997E-7 : f32
    %14 = vector.broadcast %cst_5 : f32 to vector<196x1xf32>
    %15 = arith.addf %13, %14 : vector<196x1xf32>
    %16 = math.rsqrt %15 : vector<196x1xf32>
    %c0_6 = arith.constant 0 : index
    %c0_7 = arith.constant 0 : index
    %17 = vector.load %arg2[%c0_6, %c0_7] : memref<1x384xf32, #tpu.memory_space<vmem>>, vector<1x384xf32>
    %c0_8 = arith.constant 0 : index
    %c0_9 = arith.constant 0 : index
    %18 = vector.load %arg3[%c0_8, %c0_9] : memref<1x384xf32, #tpu.memory_space<vmem>>, vector<1x384xf32>
    %19 = vector.broadcast %7 : vector<196x1xf32> to vector<196x384xf32>
    %20 = arith.subf %0, %19 : vector<196x384xf32>
    %21 = vector.broadcast %16 : vector<196x1xf32> to vector<196x384xf32>
    %22 = vector.broadcast %17 : vector<1x384xf32> to vector<196x384xf32>
    %23 = arith.mulf %21, %22 : vector<196x384xf32>
    %24 = arith.mulf %20, %23 : vector<196x384xf32>
    %25 = vector.broadcast %18 : vector<1x384xf32> to vector<196x384xf32>
    %26 = arith.addf %24, %25 : vector<196x384xf32>
    %c0_10 = arith.constant 0 : index
    %c0_11 = arith.constant 0 : index
    %27 = vector.load %arg4[%c0_10, %c0_11] : memref<196x384xf32, #tpu.memory_space<vmem>>, vector<196x384xf32>
    tpu.vector_store %arg4[%c0_10, %c0_11], %26 {strides = array<i32>} : memref<196x384xf32, #tpu.memory_space<vmem>>, vector<196x384xf32>,
    return
  }
  func.func @transform_0(%arg0: i32) -> (i32, i32) {
    %c0_i32 = arith.constant 0 : i32
    %c0_i32_0 = arith.constant 0 : i32
    return %arg0, %c0_i32 : i32, i32
  }
  func.func @transform_1(%arg0: i32) -> (i32, i32) {
    %c0_i32 = arith.constant 0 : i32
    %c0_i32_0 = arith.constant 0 : i32
    %c0_i32_1 = arith.constant 0 : i32
    return %c0_i32, %c0_i32_0 : i32, i32
  }
  func.func @transform_2(%arg0: i32) -> (i32, i32) {
    %c0_i32 = arith.constant 0 : i32
    %c0_i32_0 = arith.constant 0 : i32
    %c0_i32_1 = arith.constant 0 : i32
    return %c0_i32, %c0_i32_0 : i32, i32
  }
  func.func @transform_3(%arg0: i32) -> (i32, i32) {
    %c0_i32 = arith.constant 0 : i32
    %c0_i32_0 = arith.constant 0 : i32
    return %arg0, %c0_i32 : i32, i32
  }
}

</mosaic_0001>

<bundles_post_ra>
// kernel: tpu_custom_call.1
= control target key start
LH: loop header
LB: loop body
LE: loop exit
PB: predicated region body
PF: predicated region fallthrough
CT: control target
= control target key end

     0   :  { %8 = vsyncpa [#allocation3], 0  ;;  %s2260_s0 = inlined_call_operand.hbm [shape: f32[196,384], index: 0, kind: input, shape index: {}]   ;;  %s2261_s1 = inlined_call_operand.vmem [shape: f32[1,384], index: 1, kind: input, shape index: {}]   ;;  %s2262_s2 = inlined_call_operand.vmem [shape: f32[1,384], index: 2, kind: input, shape index: {}]   ;;  %s2263_s3 = inlined_call_operand.hbm [shape: f32[196,384], index: 3, kind: output, shape index: {}]  }
   0x1   :  { %9 = vsyncpa [#allocation4], 0  ;;  %s1107_s12 = smov [#allocation2]   ;;  %s1059_s16 = scalar_lea.hbm %s2260_s0, 9600 }
   0x2   :  { %s15_s13 = sshll.u32 %s1107_s12, 4  ;;  %p1060_p0 = scmp.ne.s32.totalorder %s2260_s0, %s1059_s16  ;;  %s16_s13 = int_to_ptr.vmem [resolvable:$true] %s15_s13 }
   0x3   :  { %p1063_p1 = scmp.lt.u32.totalorder %s1059_s16, %s2260_s0 }
   0x5   :  { %p1065_p2 = pnand %p1063_p1, %p1060_p0 }
   0x7   :  { %1068 = shalt.err (!%p1065_p2)
}
   0x8   :  { %s1069_s21 = scalar_lea.vmem %s16_s13, 9600  ;;  %p1074_p4 = scmp.lt.s32.totalorder %s16_s13, %s16_s13 }
   0x9   :  { %p1070_p3 = scmp.ne.s32.totalorder %s16_s13, %s1069_s21  ;;  %p1075_p5 = scmp.lt.s32.totalorder %s1069_s21, %s1069_s21 }
   0xb   :  { %p1076_p6 = por %p1075_p5, %p1074_p4 }
   0xd   :  { %p1077_p7 = pnand %p1076_p6, %p1070_p3 }
   0xf   :  { %1080 = shalt.err (!%p1077_p7)
}
  0x10   :  { %s1108_s22 = smov 384   ;;  %s1109_s23 = smov 24  }
  0x11   :  { %21 = dma.hbm_to_vmem [thread:$0]  %s2260_s0, 9600, %s16_s13, [#allocation3], %s1108_s22, %s1108_s22, %s1109_s23  }
  0x12   :  { %1103 = dma.done.wait [#allocation3], 9600  }
  0x13   :  { %1104 = vsyncadd [#allocation3], 4294957696  ;;  %v1146_v0 = vld [vmem:[#allocation2 + $0x30] sm:$0xff]  ;;  %v1148_v1 = vld [vmem:[#allocation2 + $0x38] sm:$0xff]  ;;  %vm200_vm0 = vcmask 1043456  }
  0x14   :  { %2385 = vst [vmem:[#allocation8_spill] sm:$0xff] %v1146_v0  ;;  %2386 = vst [vmem:[#allocation9_spill] sm:$0xff] %v1148_v1  ;;  %v1150_v2 = vld [vmem:[#allocation2 + $0x40] sm:$0xff]  ;;  %v112_v3 = vadd.f32 %v1148_v1, %v1146_v0  ;;  %v1156_v5 = vld [vmem:[#allocation2 + $0x8] sm:$0xff] }
  0x15   :  { %2387 = vst [vmem:[#allocation10_spill] sm:$0xff] %v1150_v2  ;;  %v1154_v4 = vld [vmem:[#allocation2] sm:$0xff]  ;;  %2389 = vst [vmem:[#allocation12_spill] sm:$0xff] %v1156_v5  ;;  %v1158_v6 = vld [vmem:[#allocation2 + $0x10] sm:$0xff] }
  0x16   :  { %2388 = vst [vmem:[#allocation11_spill] sm:$0xff] %v1154_v4  ;;  %2390 = vst [vmem:[#allocation13_spill] sm:$0xff] %v1158_v6  ;;  %v104_v7 = vadd.f32 %v1156_v5, %v1154_v4  ;;  %v1162_v8 = vld [vmem:[#allocation2 + $0x48] sm:$0xff]  ;;  %v1164_v9 = vld [vmem:[#allocation2 + $0x50] sm:$0xff]  ;;  %v113_v11 = vadd.f32 %v112_v3, %v1150_v2 }
  0x17   :  { %2391 = vst [vmem:[#allocation14_spill] sm:$0xff] %v1162_v8  ;;  %2392 = vst [vmem:[#allocation15_spill] sm:$0xff] %v1164_v9  ;;  %v1166_v10 = vld [vmem:[#allocation2 + $0x58] sm:$0xff]  ;;  %v116_v12 = vadd.f32 %v1164_v9, %v1162_v8  ;;  %v1173_v14 = vld [vmem:[#allocation2 + $0x20] sm:$0xff] }
  0x18   :  { %2393 = vst [vmem:[#allocation16_spill] sm:$0xff] %v1166_v10  ;;  %v1171_v13 = vld [vmem:[#allocation2 + $0x18] sm:$0xff]  ;;  %2395 = vst [vmem:[#allocation18_spill] sm:$0xff] %v1173_v14  ;;  %v1175_v15 = vld [vmem:[#allocation2 + $0x28] sm:$0xff]  ;;  %v105_v16 = vadd.f32 %v104_v7, %v1158_v6  ;;  %114 = vadd.xlane.f32.xlu1 %v113_v11 }
  0x19   :  { %2394 = vst [vmem:[#allocation17_spill] sm:$0xff] %v1171_v13  ;;  %v108_v17 = vadd.f32 %v1173_v14, %v1171_v13  ;;  %v1180_v18 = vld [vmem:[#allocation2 + $0x78] sm:$0xff]  ;;  %v1182_v19 = vld [vmem:[#allocation2 + $0x80] sm:$0xff]  ;;  %v117_v20 = vadd.f32 %v116_v12, %v1166_v10  ;;  %v1189_v23 = vld [vmem:[#allocation2 + $0x68] sm:$0xff] }
  0x1a   :  { %2396 = vst [vmem:[#allocation19_spill] sm:$0xff] %v1180_v18  ;;  %2397 = vst [vmem:[#allocation20_spill] sm:$0xff] %v1182_v19  ;;  %v124_v21 = vadd.f32 %v1182_v19, %v1180_v18  ;;  %v1187_v22 = vld [vmem:[#allocation2 + $0x60] sm:$0xff]  ;;  %106 = vadd.xlane.f32.xlu0 %v105_v16  ;;  %v1192_v25 = vld [vmem:[#allocation2 + $0x88] sm:$0xff] }
  0x1b   :  { %v109_v24 = vadd.f32 %v108_v17, %v1175_v15  ;;  %2398 = vst [vmem:[#allocation21_spill] sm:$0xff] %v1192_v25  ;;  %v120_v26 = vadd.f32 %v1189_v23, %v1187_v22  ;;  %v1196_v27 = vld [vmem:[#allocation2 + $0xa8] sm:$0xff]  ;;  %v1198_v28 = vld [vmem:[#allocation2 + $0xb0] sm:$0xff]  ;;  %v1204_v31 = vld [vmem:[#allocation2 + $0x98] sm:$0xff] }
  0x1c   :  { %2399 = vst [vmem:[#allocation22_spill] sm:$0xff] %v1196_v27  ;;  %2400 = vst [vmem:[#allocation23_spill] sm:$0xff] %v1198_v28  ;;  %v1200_v29 = vld [vmem:[#allocation2 + $0x70] sm:$0xff]  ;;  %118 = vadd.xlane.f32.xlu1 %v117_v20  ;;  %v125_v32 = vadd.f32 %v124_v21, %v1192_v25  ;;  %v132_v33 = vadd.f32 %v1198_v28, %v1196_v27  ;;  %v1210_v35 = vld [vmem:[#allocation2 + $0xb8] sm:$0xff] }
  0x1d   :  { %v1202_v30 = vld [vmem:[#allocation2 + $0x90] sm:$0xff]  ;;  %v121_v34 = vadd.f32 %v120_v26, %v1200_v29  ;;  %2401 = vst [vmem:[#allocation24_spill] sm:$0xff] %v1210_v35  ;;  %v1214_v37 = vld [vmem:[#allocation2 + $0xd8] sm:$0xff]  ;;  %v1216_v38 = vld [vmem:[#allocation2 + $0xe0] sm:$0xff] }
  0x1e   :  { %110 = vadd.xlane.f32.xlu0 %v109_v24  ;;  %v128_v36 = vadd.f32 %v1204_v31, %v1202_v30  ;;  %2402 = vst [vmem:[#allocation25_spill] sm:$0xff] %v1214_v37  ;;  %2403 = vst [vmem:[#allocation26_spill] sm:$0xff] %v1216_v38  ;;  %v1218_v39 = vld [vmem:[#allocation2 + $0xa0] sm:$0xff]  ;;  %v1222_v41 = vld [vmem:[#allocation2 + $0xc8] sm:$0xff]  ;;  %v133_v42 = vadd.f32 %v132_v33, %v1210_v35  ;;  %v140_v43 = vadd.f32 %v1216_v38, %v1214_v37 }
  0x1f   :  { %v1220_v40 = vld [vmem:[#allocation2 + $0xc0] sm:$0xff]  ;;  %v1228_v45 = vld [vmem:[#allocation2 + $0xe8] sm:$0xff]  ;;  %v1234_v48 = vld [vmem:[#allocation2 + $0x110] sm:$0xff] }
  0x20   :  { %2404 = vst [vmem:[#allocation27_spill] sm:$0xff] %v1220_v40  ;;  %126 = vadd.xlane.f32.xlu1 %v125_v32  ;;  %v129_v44 = vadd.f32 %v128_v36, %v1218_v39  ;;  %2405 = vst [vmem:[#allocation28_spill] sm:$0xff] %v1228_v45  ;;  %v136_v46 = vadd.f32 %v1222_v41, %v1220_v40  ;;  %v1232_v47 = vld [vmem:[#allocation2 + $0x108] sm:$0xff]  ;;  %v1236_v49 = vld [vmem:[#allocation2 + $0xd0] sm:$0xff]  ;;  %v141_v52 = vadd.f32 %v140_v43, %v1228_v45 }
  0x21   :  { %2406 = vst [vmem:[#allocation29_spill] sm:$0xff] %v1232_v47  ;;  %2407 = vst [vmem:[#allocation30_spill] sm:$0xff] %v1234_v48  ;;  %v1238_v50 = vld [vmem:[#allocation2 + $0xf0] sm:$0xff]  ;;  %v1240_v51 = vld [vmem:[#allocation2 + $0xf8] sm:$0xff]  ;;  %v148_v53 = vadd.f32 %v1234_v48, %v1232_v47 }
  0x22   :  { %122 = vadd.xlane.f32.xlu0 %v121_v34  ;;  %2408 = vst [vmem:[#allocation31_spill] sm:$0xff] %v1238_v50  ;;  %2409 = vst [vmem:[#allocation32_spill] sm:$0xff] %v1240_v51  ;;  %v137_v54 = vadd.f32 %v136_v46, %v1236_v49  ;;  %v1246_v55 = vld [vmem:[#allocation2 + $0x118] sm:$0xff]  ;;  %v144_v56 = vadd.f32 %v1240_v51, %v1238_v50  ;;  %v1252_v58 = vld [vmem:[#allocation2 + $0x140] sm:$0xff] }
  0x23   :  { %2410 = vst [vmem:[#allocation33_spill] sm:$0xff] %v1246_v55  ;;  %v1250_v57 = vld [vmem:[#allocation2 + $0x138] sm:$0xff]  ;;  %2412 = vst [vmem:[#allocation35_spill] sm:$0xff] %v1252_v58  ;;  %v1254_v59 = vld [vmem:[#allocation2 + $0x100] sm:$0xff]  ;;  %v149_v62 = vadd.f32 %v148_v53, %v1246_v55 }
  0x24   :  { %134 = vadd.xlane.f32.xlu1 %v133_v42  ;;  %2411 = vst [vmem:[#allocation34_spill] sm:$0xff] %v1250_v57  ;;  %2413 = vst [vmem:[#allocation36_spill] sm:$0xff] %v1254_v59  ;;  %v1256_v60 = vld [vmem:[#allocation2 + $0x120] sm:$0xff]  ;;  %v1258_v61 = vld [vmem:[#allocation2 + $0x128] sm:$0xff]  ;;  %v156_v63 = vadd.f32 %v1252_v58, %v1250_v57  ;;  %v145_v3 = vadd.f32 %v144_v56, %v1254_v59 }
  0x25   :  { %2414 = vst [vmem:[#allocation37_spill] sm:$0xff] %v1256_v60  ;;  %2415 = vst [vmem:[#allocation38_spill] sm:$0xff] %v1258_v61  ;;  %v1264_v7 = vld [vmem:[#allocation2 + $0x148] sm:$0xff]  ;;  %v152_v11 = vadd.f32 %v1258_v61, %v1256_v60  ;;  %v1270_v16 = vld [vmem:[#allocation2 + $0x170] sm:$0xff] }
  0x26   :  { %130 = vadd.xlane.f32.xlu0 %v129_v44  ;;  %2416 = vst [vmem:[#allocation39_spill] sm:$0xff] %v1264_v7  ;;  %v1268_v12 = vld [vmem:[#allocation2 + $0x168] sm:$0xff]  ;;  %2418 = vst [vmem:[#allocation41_spill] sm:$0xff] %v1270_v16  ;;  %v1272_v17 = vld [vmem:[#allocation2 + $0x130] sm:$0xff]  ;;  %v157_v24 = vadd.f32 %v156_v63, %v1264_v7 }
  0x27   :  { %2417 = vst [vmem:[#allocation40_spill] sm:$0xff] %v1268_v12  ;;  %2419 = vst [vmem:[#allocation42_spill] sm:$0xff] %v1272_v17  ;;  %v1274_v20 = vld [vmem:[#allocation2 + $0x150] sm:$0xff]  ;;  %v1276_v21 = vld [vmem:[#allocation2 + $0x158] sm:$0xff]  ;;  %v164_v26 = vadd.f32 %v1270_v16, %v1268_v12  ;;  %v153_v32 = vadd.f32 %v152_v11, %v1272_v17 }
  0x28   :  { %142 = vadd.xlane.f32.xlu1 %v141_v52  ;;  %2420 = vst [vmem:[#allocation43_spill] sm:$0xff] %v1274_v20  ;;  %2421 = vst [vmem:[#allocation44_spill] sm:$0xff] %v1276_v21  ;;  %v1282_v33 = vld [vmem:[#allocation2 + $0x178] sm:$0xff]  ;;  %v160_v34 = vadd.f32 %v1276_v21, %v1274_v20  ;;  %v1288_v42 = vld [vmem:[#allocation2 + $0x1a0] sm:$0xff] }
  0x29   :  { %2422 = vst [vmem:[#allocation45_spill] sm:$0xff] %v1282_v33  ;;  %v1286_v36 = vld [vmem:[#allocation2 + $0x198] sm:$0xff]  ;;  %2424 = vst [vmem:[#allocation47_spill] sm:$0xff] %v1288_v42  ;;  %v1290_v43 = vld [vmem:[#allocation2 + $0x160] sm:$0xff]  ;;  %v165_v52 = vadd.f32 %v164_v26, %v1282_v33 }
  0x2a   :  { %138 = vadd.xlane.f32.xlu0 %v137_v54  ;;  %2423 = vst [vmem:[#allocation46_spill] sm:$0xff] %v1286_v36  ;;  %2425 = vst [vmem:[#allocation48_spill] sm:$0xff] %v1290_v43  ;;  %v1292_v44 = vld [vmem:[#allocation2 + $0x180] sm:$0xff]  ;;  %v1294_v46 = vld [vmem:[#allocation2 + $0x188] sm:$0xff]  ;;  %v172_v53 = vadd.f32 %v1288_v42, %v1286_v36  ;;  %v161_v54 = vadd.f32 %v160_v34, %v1290_v43 }
  0x2b   :  { %2426 = vst [vmem:[#allocation49_spill] sm:$0xff] %v1292_v44  ;;  %2427 = vst [vmem:[#allocation50_spill] sm:$0xff] %v1294_v46  ;;  %v1300_v56 = vld [vmem:[#allocation2 + $0x1a8] sm:$0xff]  ;;  %v1308_v11 = vld [vmem:[#allocation2 + $0x190] sm:$0xff] }
  0x2c   :  { %150 = vadd.xlane.f32.xlu1 %v149_v62  ;;  %2428 = vst [vmem:[#allocation51_spill] sm:$0xff] %v1300_v56  ;;  %v168_v62 = vadd.f32 %v1294_v46, %v1292_v44  ;;  %v1304_v63 = vld [vmem:[#allocation2 + $0x1c8] sm:$0xff]  ;;  %2431 = vst [vmem:[#allocation54_spill] sm:$0xff] %v1308_v11  ;;  %v1312_v26 = vld [vmem:[#allocation2 + $0x1b8] sm:$0xff] }
  0x2d   :  { %2429 = vst [vmem:[#allocation52_spill] sm:$0xff] %v1304_v63  ;;  %2433 = vst [vmem:[#allocation56_spill] sm:$0xff] %v1312_v26  ;;  %v1318_v36 = vld [vmem:[#allocation2 + $0x1d8] sm:$0xff]  ;;  %v1324_v12 = vld [vmem:[#allocation2 + $0x200] sm:$0xff] }
  0x2e   :  { %146 = vadd.xlane.f32.xlu0 %v145_v3  ;;  %v1306_v3 = vld [vmem:[#allocation2 + $0x1d0] sm:$0xff]  ;;  %v169_v42 = vadd.f32 %v168_v62, %v1308_v11  ;;  %2434 = vst [vmem:[#allocation57_spill] sm:$0xff] %v1318_v36  ;;  %v1322_v16 = vld [vmem:[#allocation2 + $0x1f8] sm:$0xff]  ;;  %2436 = vst [vmem:[#allocation59_spill] sm:$0xff] %v1324_v12 }
  0x2f   :  { %2430 = vst [vmem:[#allocation53_spill] sm:$0xff] %v1306_v3  ;;  %v180_v34 = vadd.f32 %v1306_v3, %v1304_v63  ;;  %2435 = vst [vmem:[#allocation58_spill] sm:$0xff] %v1322_v16  ;;  %v1326_v46 = vld [vmem:[#allocation2 + $0x1c0] sm:$0xff]  ;;  %v188_v62 = vadd.f32 %v1324_v12, %v1322_v16  ;;  %v1336_v3 = vld [vmem:[#allocation2 + $0x208] sm:$0xff] }
  0x30   :  { %158 = vadd.xlane.f32.xlu1 %v157_v24  ;;  %v1310_v24 = vld [vmem:[#allocation2 + $0x1b0] sm:$0xff]  ;;  %2437 = vst [vmem:[#allocation60_spill] sm:$0xff] %v1326_v46  ;;  %2440 = vst [vmem:[#allocation63_spill] sm:$0xff] %v1336_v3  ;;  %v1340_v11 = vld [vmem:[#allocation2 + $0x228] sm:$0xff] }
  0x31   :  { %2432 = vst [vmem:[#allocation55_spill] sm:$0xff] %v1310_v24  ;;  %v176_v33 = vadd.f32 %v1312_v26, %v1310_v24  ;;  %2441 = vst [vmem:[#allocation64_spill] sm:$0xff] %v1340_v11  ;;  %v1342_v26 = vld [vmem:[#allocation2 + $0x230] sm:$0xff]  ;;  %v1354_v12 = vld [vmem:[#allocation2 + $0x240] sm:$0xf] }
  0x32   :  { %154 = vadd.xlane.f32.xlu0 %v153_v32  ;;  %v173_v32 = vadd.f32 %v172_v53, %v1300_v56  ;;  %v1330_v53 = vld [vmem:[#allocation2 + $0x1e8] sm:$0xff]  ;;  %2442 = vst [vmem:[#allocation65_spill] sm:$0xff] %v1342_v26  ;;  %v1344_v24 = vld [vmem:[#allocation2 + $0x1f0] sm:$0xff]  ;;  %2443 = vst [vmem:[#allocation66_spill] sm:$0xff] %v1354_v12  ;;  %v201_v44 = vsel %vm200_vm0, %v1354_v12, 0.0  ;;  %v211_v12 = vmul.f32 %v1171_v13, %v1171_v13 }
  0x33   :  { %2439 = vst [vmem:[#allocation62_spill] sm:$0xff] %v1330_v53  ;;  %v177_v56 = vadd.f32 %v176_v33, %v1326_v46  ;;  %v209_v33 = vmul.f32 %v1156_v5, %v1156_v5  ;;  %v1356_v16 = vld [vmem:[#allocation2 + $0x248] sm:$0xf]  ;;  %v1362_v46 = vld [vmem:[#allocation2 + $0x238] sm:$0xff]  ;;  %v1366_v5 = vld [vmem:[#allocation2 + $0x220] sm:$0xff] }
  0x34   :  { %166 = vadd.xlane.f32.xlu1 %v165_v52  ;;  %v1328_v52 = vld [vmem:[#allocation2 + $0x1e0] sm:$0xff]  ;;  %2444 = vst [vmem:[#allocation67_spill] sm:$0xff] %v1356_v16 }
  0x35   :  { %2438 = vst [vmem:[#allocation61_spill] sm:$0xff] %v1328_v52  ;;  %v184_v63 = vadd.f32 %v1330_v53, %v1328_v52  ;;  %v196_v53 = vadd.f32 %v1342_v26, %v1340_v11  ;;  %v215_v11 = vmul.f32 %v1148_v1, %v1148_v1  ;;  %v216_v1 = vmul.f32 %v1150_v2, %v1150_v2 }
  0x36   :  { %162 = vadd.xlane.f32.xlu0 %v161_v54  ;;  %v181_v54 = vadd.f32 %v180_v34, %v1318_v36  ;;  %v1348_v34 = vld [vmem:[#allocation2 + $0x218] sm:$0xff]  ;;  %v189_v36 = vadd.f32 %v188_v62, %v1336_v3  ;;  %v210_v62 = vmul.f32 %v1158_v6, %v1158_v6 }
  0x37   :  { %v185_v52 = vadd.f32 %v184_v63, %v1344_v24  ;;  %v214_v63 = vmul.f32 %v1146_v0, %v1146_v0  ;;  %v197_v3 = vadd.f32 %v196_v53, %v1362_v46  ;;  %v213_v53 = vmul.f32 %v1175_v15, %v1175_v15 }
  0x38   :  { %174 = vadd.xlane.f32.xlu1 %v173_v32  ;;  %v1346_v32 = vld [vmem:[#allocation2 + $0x210] sm:$0xff] }
  0x3a   :  { %170 = vadd.xlane.f32.xlu0 %v169_v42  ;;  %v208_v42 = vmul.f32 %v1154_v4, %v1154_v4  ;;  %v192_v4 = vadd.f32 %v1348_v34, %v1346_v32 }
  0x3c   :  { %182 = vadd.xlane.f32.xlu1 %v181_v54  ;;  %v202_v54 = vsel %vm200_vm0, %v1356_v16, 0.0  ;;  %v283_v26 = vadd.f32 %v209_v33, %v208_v42  ;;  %v212_v16 = vmul.f32 %v1173_v14, %v1173_v14  ;;  %v193_v42 = vadd.f32 %v192_v4, %v1366_v5 }
  0x3d   :  { %v203_v33 = vadd.f32 %v202_v54, %v201_v44  ;;  %v220_v14 = vmul.f32 %v1187_v22, %v1187_v22  ;;  %v221_v4 = vmul.f32 %v1189_v23, %v1189_v23  ;;  %v222_v54 = vmul.f32 %v1200_v29, %v1200_v29 }
  0x3e   :  { %178 = vadd.xlane.f32.xlu0 %v177_v56  ;;  %v1374_v56 = vld [vmem:[#allocation2 + $0x250] sm:$0xf]  ;;  %v284_v0 = vadd.f32 %v283_v26, %v210_v62  ;;  %v287_v13 = vadd.f32 %v212_v16, %v211_v12  ;;  %v217_v26 = vmul.f32 %v1162_v8, %v1162_v8  ;;  %v227_v12 = vmul.f32 %v1204_v31, %v1204_v31 }
  0x3f   :  { %v204_v6 = vsel %vm200_vm0, %v1374_v56, 0.0  ;;  %v299_v62 = vadd.f32 %v221_v4, %v220_v14  ;;  %v233_v14 = vmul.f32 %v1222_v41, %v1222_v41  ;;  %v230_v4 = vmul.f32 %v1198_v28, %v1198_v28 }
  0x40   :  { %190 = vadd.xlane.f32.xlu1 %v189_v36  ;;  %v291_v36 = vadd.f32 %v215_v11, %v214_v63  ;;  %v205_v44 = vadd.f32 %v204_v6, %v203_v33  ;;  %v288_v11 = vadd.f32 %v287_v13, %v213_v53  ;;  %v219_v6 = vmul.f32 %v1166_v10, %v1166_v10 }
  0x41   :  { %v224_v33 = vmul.f32 %v1182_v19, %v1182_v19  ;;  %v232_v13 = vmul.f32 %v1220_v40, %v1220_v40  ;;  %v229_v53 = vmul.f32 %v1196_v27, %v1196_v27 }
  0x42   :  { %186 = vadd.xlane.f32.xlu0 %v185_v52  ;;  %v218_v52 = vmul.f32 %v1164_v9, %v1164_v9  ;;  %v292_v16 = vadd.f32 %v291_v36, %v216_v1  ;;  %v300_v36 = vadd.f32 %v299_v62, %v222_v54  ;;  %v238_v62 = vmul.f32 %v1238_v50, %v1238_v50 }
  0x43   :  { %v315_v40 = vadd.f32 %v233_v14, %v232_v13  ;;  %v311_v54 = vadd.f32 %v230_v4, %v229_v53  ;;  %v240_v14 = vmul.f32 %v1254_v59, %v1254_v59  ;;  %v237_v53 = vmul.f32 %v1228_v45, %v1228_v45 }
  0x44   :  { %198 = vadd.xlane.f32.xlu1 %v197_v3  ;;  %v226_v3 = vmul.f32 %v1202_v30, %v1202_v30  ;;  %v295_v63 = vadd.f32 %v218_v52, %v217_v26  ;;  %v225_v26 = vmul.f32 %v1192_v25, %v1192_v25 }
  0x46   :  { %194 = vadd.xlane.f32.xlu0 %v193_v42  ;;  %v223_v42 = vmul.f32 %v1180_v18, %v1180_v18  ;;  %v307_v1 = vadd.f32 %v227_v12, %v226_v3  ;;  %v234_v12 = vmul.f32 %v1236_v49, %v1236_v49 }
  0x48   :  { %285 = vadd.xlane.f32.xlu1 %v284_v0  ;;  %v228_v0 = vmul.f32 %v1218_v39, %v1218_v39  ;;  %v303_v52 = vadd.f32 %v224_v33, %v223_v42  ;;  %v236_v42 = vmul.f32 %v1216_v38, %v1216_v38  ;;  %v244_v33 = vmul.f32 %v1256_v60, %v1256_v60 }
  0x4a   :  { %206 = vadd.xlane.f32.xlu0 %v205_v44  ;;  %v296_v44 = vadd.f32 %v295_v63, %v219_v6  ;;  %v308_v3 = vadd.f32 %v307_v1, %v228_v0  ;;  %v304_v6 = vadd.f32 %v303_v52, %v225_v26  ;;  %v235_v63 = vmul.f32 %v1214_v37, %v1214_v37 }
  0x4b   :  { %v245_v0 = vmul.f32 %v1258_v61, %v1258_v61  ;;  %v316_v1 = vadd.f32 %v315_v40, %v234_v12  ;;  %v242_v26 = vmul.f32 %v1234_v48, %v1234_v48  ;;  %v246_v52 = vmul.f32 %v1272_v17, %v1272_v17  ;;  %v2454_v17 = vld [vmem:[#allocation47_spill] sm:$0xff]  ;;  %v2455_v61 = vld [vmem:[#allocation60_spill] sm:$0xff] }
  0x4c   :  { %293 = vadd.xlane.f32.xlu1 %v292_v16  ;;  %v231_v16 = vmul.f32 %v1210_v35, %v1210_v35  ;;  %v319_v4 = vadd.f32 %v236_v42, %v235_v63  ;;  %v243_v12 = vmul.f32 %v1246_v55, %v1246_v55  ;;  %v248_v63 = vmul.f32 %v1252_v58, %v1252_v58 }
  0x4d   :  { %v331_v40 = vadd.f32 %v245_v0, %v244_v33  ;;  %v252_v33 = vmul.f32 %v1290_v43, %v1290_v43 }
  0x4e   :  { %289 = vadd.xlane.f32.xlu0 %v288_v11  ;;  %v239_v11 = vmul.f32 %v1240_v51, %v1240_v51  ;;  %v312_v13 = vadd.f32 %v311_v54, %v231_v16  ;;  %v250_v16 = vmul.f32 %v1274_v20, %v1274_v20  ;;  %v251_v54 = vmul.f32 %v1276_v21, %v1276_v21  ;;  %v2451_v20 = vld [vmem:[#allocation54_spill] sm:$0xff] }
  0x4f   :  { %v332_v42 = vadd.f32 %v331_v40, %v246_v52  ;;  %v2448_v40 = vld [vmem:[#allocation41_spill] sm:$0xff] }
  0x50   :  { %301 = vadd.xlane.f32.xlu1 %v300_v36  ;;  %v323_v36 = vadd.f32 %v239_v11, %v238_v62  ;;  %v320_v62 = vadd.f32 %v319_v4, %v237_v53  ;;  %v339_v0 = vadd.f32 %v251_v54, %v250_v16  ;;  %v254_v43 = vmul.f32 %v2448_v40, %v2448_v40  ;;  %v2450_v54 = vld [vmem:[#allocation56_spill] sm:$0xff] }
  0x51   :  { %v263_v21 = vmul.f32 %v2450_v54, %v2450_v54 }
  0x52   :  { %297 = vadd.xlane.f32.xlu0 %v296_v44  ;;  %v241_v44 = vmul.f32 %v1232_v47, %v1232_v47 }
  0x54   :  { %309 = vadd.xlane.f32.xlu1 %v308_v3  ;;  %v324_v3 = vadd.f32 %v323_v36, %v240_v14  ;;  %v327_v11 = vadd.f32 %v242_v26, %v241_v44  ;;  %v2445_v14 = vld [vmem:[#allocation49_spill] sm:$0xff]  ;;  %v2446_v36 = vld [vmem:[#allocation50_spill] sm:$0xff]  ;;  %v2447_v26 = vld [vmem:[#allocation40_spill] sm:$0xff] }
  0x55   :  { %v257_v53 = vmul.f32 %v2446_v36, %v2446_v36  ;;  %v253_v52 = vmul.f32 %v2447_v26, %v2447_v26  ;;  %v258_v36 = vmul.f32 %v2451_v20, %v2451_v20  ;;  %v2453_v26 = vld [vmem:[#allocation46_spill] sm:$0xff] }
  0x56   :  { %305 = vadd.xlane.f32.xlu0 %v304_v6  ;;  %v247_v6 = vmul.f32 %v1250_v57, %v1250_v57  ;;  %v328_v4 = vadd.f32 %v327_v11, %v243_v12  ;;  %v2452_v12 = vld [vmem:[#allocation45_spill] sm:$0xff]  ;;  %v259_v40 = vmul.f32 %v2453_v26, %v2453_v26 }
  0x57   :  { %v255_v11 = vmul.f32 %v2452_v12, %v2452_v12 }
  0x58   :  { %317 = vadd.xlane.f32.xlu1 %v316_v1  ;;  %v249_v1 = vmul.f32 %v1264_v7, %v1264_v7  ;;  %v335_v44 = vadd.f32 %v248_v63, %v247_v6  ;;  %v343_v63 = vadd.f32 %v254_v43, %v253_v52 }
  0x5a   :  { %313 = vadd.xlane.f32.xlu0 %v312_v13  ;;  %v256_v13 = vmul.f32 %v2445_v14, %v2445_v14  ;;  %v340_v14 = vadd.f32 %v339_v0, %v252_v33  ;;  %v336_v6 = vadd.f32 %v335_v44, %v249_v1  ;;  %v2456_v0 = vld [vmem:[#allocation61_spill] sm:$0xff]  ;;  %v2458_v1 = vld [vmem:[#allocation52_spill] sm:$0xff]  ;;  %v344_v20 = vadd.f32 %v343_v63, %v255_v11  ;;  %v2462_v63 = vld [vmem:[#allocation58_spill] sm:$0xff] }
  0x5b   :  { %v268_v54 = vmul.f32 %v2456_v0, %v2456_v0  ;;  %v265_v43 = vmul.f32 %v2458_v1, %v2458_v1  ;;  %v2459_v44 = vld [vmem:[#allocation53_spill] sm:$0xff] }
  0x5c   :  { %325 = vadd.xlane.f32.xlu1 %v324_v3  ;;  %v2449_v3 = vld [vmem:[#allocation55_spill] sm:$0xff]  ;;  %v266_v52 = vmul.f32 %v2459_v44, %v2459_v44 }
  0x5d   :  { %v262_v16 = vmul.f32 %v2449_v3, %v2449_v3  ;;  %v260_v3 = vmul.f32 %v2454_v17, %v2454_v17  ;;  %v2460_v17 = vld [vmem:[#allocation51_spill] sm:$0xff] }
  0x5e   :  { %321 = vadd.xlane.f32.xlu0 %v320_v62  ;;  %v347_v62 = vadd.f32 %v257_v53, %v256_v13  ;;  %v2457_v13 = vld [vmem:[#allocation62_spill] sm:$0xff]  ;;  %v359_v11 = vadd.f32 %v266_v52, %v265_v43  ;;  %v2466_v43 = vld [vmem:[#allocation63_spill] sm:$0xff] }
  0x5f   :  { %v355_v33 = vadd.f32 %v263_v21, %v262_v16  ;;  %v269_v53 = vmul.f32 %v2457_v13, %v2457_v13  ;;  %v351_v21 = vadd.f32 %v260_v3, %v259_v40  ;;  %v270_v16 = vmul.f32 %v1344_v24, %v1344_v24  ;;  %v2463_v40 = vld [vmem:[#allocation59_spill] sm:$0xff] }
  0x60   :  { %333 = vadd.xlane.f32.xlu1 %v332_v42  ;;  %v264_v42 = vmul.f32 %v2455_v61, %v2455_v61  ;;  %v261_v61 = vmul.f32 %v2460_v17, %v2460_v17  ;;  %v271_v13 = vmul.f32 %v2462_v63, %v2462_v63  ;;  %v272_v3 = vmul.f32 %v2463_v40, %v2463_v40 }
  0x61   :  { %v363_v26 = vadd.f32 %v269_v53, %v268_v54  ;;  %v2464_v54 = vld [vmem:[#allocation66_spill] sm:$0xff]  ;;  %v276_v53 = vmul.f32 %v1366_v5, %v1366_v5  ;;  %v273_v44 = vmul.f32 %v2466_v43, %v2466_v43 }
  0x62   :  { %329 = vadd.xlane.f32.xlu0 %v328_v4  ;;  %v348_v4 = vadd.f32 %v347_v62, %v258_v36  ;;  %v356_v0 = vadd.f32 %v355_v33, %v264_v42  ;;  %v275_v36 = vmul.f32 %v1348_v34, %v1348_v34  ;;  %v2461_v62 = vld [vmem:[#allocation57_spill] sm:$0xff]  ;;  %v352_v24 = vadd.f32 %v351_v21, %v261_v61 }
  0x63   :  { %v280_v42 = vmul.f32 %v2464_v54, %v2464_v54  ;;  %v364_v34 = vadd.f32 %v363_v26, %v270_v16  ;;  %v367_v52 = vadd.f32 %v272_v3, %v271_v13  ;;  %v282_v61 = vmul.f32 %v1374_v56, %v1374_v56  ;;  %v2468_v16 = vld [vmem:[#allocation65_spill] sm:$0xff] }
  0x64   :  { %341 = vadd.xlane.f32.xlu1 %v340_v14  ;;  %v274_v14 = vmul.f32 %v1346_v32, %v1346_v32  ;;  %v2465_v32 = vld [vmem:[#allocation67_spill] sm:$0xff]  ;;  %v278_v5 = vmul.f32 %v2468_v16, %v2468_v16  ;;  %v279_v56 = vmul.f32 %v1362_v46, %v1362_v46  ;;  %v639_v46 = vlaneseq }
  0x65   :  { %v281_v33 = vmul.f32 %v2465_v32, %v2465_v32 }
  0x66   :  { %337 = vadd.xlane.f32.xlu0 %v336_v6  ;;  %v267_v6 = vmul.f32 %v2461_v62, %v2461_v62  ;;  %v2467_v62 = vld [vmem:[#allocation64_spill] sm:$0xff] }
  0x67   :  { %v380_v21 = vsel %vm200_vm0, %v281_v33, 0.0  ;;  %v277_v26 = vmul.f32 %v2467_v62, %v2467_v62 }
  0x68   :  { %349 = vadd.xlane.f32.xlu1 %v348_v4  ;;  %v371_v4 = vadd.f32 %v275_v36, %v274_v14  ;;  %v360_v1 = vadd.f32 %v359_v11, %v267_v6  ;;  %v368_v36 = vadd.f32 %v367_v52, %v273_v44  ;;  %v382_v6 = vsel %vm200_vm0, %v282_v61, 0.0 }
  0x69   :  { %v375_v11 = vadd.f32 %v278_v5, %v277_v26  ;;  %v640_v52 = vshrl.u32 %v639_v46, 7  ;;  %v561_v5 = vld [vmem:[%s2261_s1] sm:$0x7]  ;;  %s1110_s1 = smov [#allocation5]  }
  0x6a   :  { %345 = vadd.xlane.f32.xlu0 %v344_v20  ;;  %v379_v20 = vsel %vm200_vm0, %v280_v42, 0.0 }
  0x6b   :  { %v381_v14 = vadd.f32 %v380_v21, %v379_v20  ;;  %v376_v13 = vadd.f32 %v375_v11, %v279_v56  ;;  %v641_v21 = vsub.s32 0, %v640_v52  ;;  %v645_v62 = vsub.s32 1, %v640_v52 }
  0x6c   :  { %357 = vadd.xlane.f32.xlu1 %v356_v0  ;;  %v372_v0 = vadd.f32 %v371_v4, %v276_v53  ;;  %v649_v26 = vsub.s32 2, %v640_v52 }
  0x6d   :  { %v383_v63 = vadd.f32 %v382_v6, %v381_v14  ;;  %v562_v14 = vld [vmem:[%s2262_s2] sm:$0x7]  ;;  %v1553_v11 = vrot.slane %v561_v5, %v641_v21  ;;  %s975_s2 = sshll.u32 %s1110_s1, 4  ;;  %s976_s2 = int_to_ptr.vmem [resolvable:$true] %s975_s2 }
  0x6e   :  { %353 = vadd.xlane.f32.xlu0 %v352_v24  ;;  %v1563_v52 = vrot.slane %v562_v14, %v641_v21  ;;  %v1565_v17 = vrot.slane %v562_v14, %v645_v62  ;;  %v2477_v21 = vld [vmem:[#allocation11_spill] sm:$0xff]  ;;  %s1081_s29 = scalar_lea.vmem %s976_s2, 9600  ;;  %p1086_p9 = scmp.lt.s32.totalorder %s976_s2, %s976_s2 }
  0x6f   :  { %2472 = vst [vmem:[#allocation53_spill] sm:$0xff] %v1553_v11  ;;  %p1082_p8 = scmp.ne.s32.totalorder %s976_s2, %s1081_s29  ;;  %p1087_p10 = scmp.lt.s32.totalorder %s1081_s29, %s1081_s29 }
  0x70   :  { %365 = vadd.xlane.f32.xlu1 %v364_v34  ;;  %2473 = vst [vmem:[#allocation57_spill] sm:$0xff] %v1563_v52 }
  0x71   :  { %p1088_p11 = por %p1087_p10, %p1086_p9 }
  0x72   :  { %361 = vadd.xlane.f32.xlu0 %v360_v1 }
  0x73   :  { %p1089_p12 = pnand %p1088_p11, %p1082_p8 }
  0x74   :  { %373 = vadd.xlane.f32.xlu1 %v372_v0 }
  0x76   :  { %369 = vadd.xlane.f32.xlu0 %v368_v36 }
  0x78   :  { %384 = vadd.xlane.f32.xlu1 %v383_v63  ;;  %v1555_v63 = vrot.slane %v561_v5, %v645_v62  ;;  %v2478_v62 = vld [vmem:[#allocation12_spill] sm:$0xff] }
  0x7a   :  { %377 = vadd.xlane.f32.xlu0 %v376_v13  ;;  %v1557_v13 = vrot.slane %v561_v5, %v649_v26  ;;  %v2482_v5 = vld [vmem:[#allocation18_spill] sm:$0xff] }
  0xa5   :  { %v115_v40 = vpop.xlane.xlu1 %114 }
  0xa6   :  { %v1542_v0 = vmul.f32 0.0026041667, %v115_v40 }
  0xa7   :  { %v107_v3 = vpop.xlane.xlu0 %106 }
  0xa8   :  { %2469 = vst [vmem:[#allocation61_spill] sm:$0xff] %v1542_v0  ;;  %v1547_v36 = vmul.f32 0.0026041667, %v107_v3  ;;  %v1567_v3 = vrot.slane %v562_v14, %v649_v26  ;;  %v2479_v14 = vld [vmem:[#allocation13_spill] sm:$0xff] }
  0xa9   :  { %v119_v24 = vpop.xlane.xlu1 %118 }
  0xaa   :  { %v1549_v6 = vmul.f32 0.0026041667, %v119_v24  ;;  %2474 = vst [vmem:[#allocation58_spill] sm:$0xff] %v1567_v3  ;;  %v1597_v52 = vmul.f32 %v1547_v36, %v1547_v36 }
  0xab   :  { %v111_v54 = vpop.xlane.xlu0 %110 }
  0xac   :  { %2470 = vst [vmem:[#allocation62_spill] sm:$0xff] %v1549_v6  ;;  %v1559_v46 = vmul.f32 0.0026041667, %v111_v54  ;;  %v1577_v54 = vmul.f32 %v1542_v0, %v1542_v0 }
  0xad   :  { %v127_v42 = vpop.xlane.xlu1 %126 }
  0xae   :  { %v1585_v12 = vmul.f32 0.0026041667, %v127_v42  ;;  %v2480_v42 = vld [vmem:[#allocation17_spill] sm:$0xff]  ;;  %v1619_v26 = vmul.f32 %v1559_v46, %v1559_v46 }
  0xaf   :  { %v123_v32 = vpop.xlane.xlu0 %122 }
  0xb0   :  { %v1591_v2 = vmul.f32 0.0026041667, %v123_v32  ;;  %v1609_v32 = vmul.f32 %v1549_v6, %v1549_v6  ;;  %v1629_v9 = vmul.f32 %v1585_v12, %v1585_v12 }
  0xb1   :  { %v135_v33 = vpop.xlane.xlu1 %134 }
  0xb2   :  { %v1603_v0 = vmul.f32 0.0026041667, %v135_v33  ;;  %v1651_v8 = vmul.f32 %v1591_v2, %v1591_v2 }
  0xb3   :  { %v131_v34 = vpop.xlane.xlu0 %130 }
  0xb4   :  { %2481 = vst [vmem:[#allocation59_spill] sm:$0xff] %v1603_v0  ;;  %v1615_v24 = vmul.f32 0.0026041667, %v131_v34  ;;  %v1662_v3 = vmul.f32 %v1603_v0, %v1603_v0 }
  0xb5   :  { %v143_v53 = vpop.xlane.xlu1 %142 }
  0xb6   :  { %v1637_v33 = vmul.f32 0.0026041667, %v143_v53  ;;  %v1673_v53 = vmul.f32 %v1615_v24, %v1615_v24 }
  0xb7   :  { %v139_v4 = vpop.xlane.xlu0 %138 }
  0xb8   :  { %2483 = vst [vmem:[#allocation66_spill] sm:$0xff] %v1637_v33  ;;  %v1645_v25 = vmul.f32 0.0026041667, %v139_v4  ;;  %v1685_v10 = vmul.f32 %v1637_v33, %v1637_v33 }
  0xb9   :  { %v1527_v1 = vpop.xlane.xlu1 %150 }
  0xba   :  { %v1658_v34 = vmul.f32 0.0026041667, %v1527_v1  ;;  %v1707_v27 = vmul.f32 %v1645_v25, %v1645_v25 }
  0xbb   :  { %v1529_v43 = vpop.xlane.xlu0 %146 }
  0xbc   :  { %2484 = vst [vmem:[#allocation67_spill] sm:$0xff] %v1658_v34  ;;  %v1669_v28 = vmul.f32 0.0026041667, %v1529_v43  ;;  %v2486_v43 = vld [vmem:[#allocation27_spill] sm:$0xff]  ;;  %v1718_v35 = vmul.f32 %v1658_v34, %v1658_v34 }
  0xbd   :  { %v1531_v44 = vpop.xlane.xlu1 %158 }
  0xbe   :  { %2485 = vst [vmem:[#allocation63_spill] sm:$0xff] %v1669_v28  ;;  %v1694_v6 = vmul.f32 0.0026041667, %v1531_v44  ;;  %v1729_v44 = vmul.f32 %v1669_v28, %v1669_v28 }
  0xbf   :  { %v1533_v61 = vpop.xlane.xlu0 %154 }
  0xc0   :  { %2487 = vst [vmem:[#allocation64_spill] sm:$0xff] %v1694_v6  ;;  %v1703_v33 = vmul.f32 0.0026041667, %v1533_v61 }
  0xc1   :  { %v1535_v20 = vpop.xlane.xlu1 %166 }
  0xc2   :  { %2488 = vst [vmem:[#allocation65_spill] sm:$0xff] %v1703_v33  ;;  %v1714_v0 = vmul.f32 0.0026041667, %v1535_v20  ;;  %v1748_v20 = vmul.f32 %v1694_v6, %v1694_v6 }
  0xc3   :  { %v1537_v16 = vpop.xlane.xlu0 %162 }
  0xc4   :  { %2489 = vst [vmem:[#allocation11_spill] sm:$0xff] %v1714_v0  ;;  %v1725_v48 = vmul.f32 0.0026041667, %v1537_v16  ;;  %v1757_v16 = vmul.f32 %v1703_v33, %v1703_v33  ;;  %v1767_v58 = vmul.f32 %v1714_v0, %v1714_v0 }
  0xc5   :  { %v1551_v56 = vpop.xlane.xlu1 %174 }
  0xc6   :  { %2471 = vst [vmem:[#allocation52_spill] sm:$0xff] %v1551_v56  ;;  %2490 = vst [vmem:[#allocation12_spill] sm:$0xff] %v1725_v48  ;;  %v1780_v0 = vmul.f32 %v1725_v48, %v1725_v48 }
  0xc7   :  { %v1561_v40 = vpop.xlane.xlu0 %170 }
  0xc8   :  { %v1772_v61 = vmul.f32 0.0026041667, %v1561_v40 }
  0xc9   :  { %v1593_v56 = vpop.xlane.xlu1 %182 }
  0xca   :  { %v1785_v40 = vmul.f32 0.0026041667, %v1593_v56 }
  0xcb   :  { %v1605_v11 = vpop.xlane.xlu0 %178 }
  0xcc   :  { %2503 = vst [vmem:[#allocation17_spill] sm:$0xff] %v1785_v40  ;;  %v1791_v37 = vmul.f32 0.0026041667, %v1605_v11 }
  0xcd   :  { %v1639_v18 = vpop.xlane.xlu1 %190  ;;  %v2492_v59 = vld [vmem:[#allocation52_spill] sm:$0xff] }
  0xce   :  { %v1744_v51 = vmul.f32 0.0026041667, %v2492_v59  ;;  %2505 = vst [vmem:[#allocation18_spill] sm:$0xff] %v1791_v37  ;;  %v1816_v45 = vmul.f32 0.0026041667, %v1639_v18  ;;  %v2527_v18 = vld [vmem:[#allocation9_spill] sm:$0xff] }
  0xcf   :  { %v1647_v19 = vpop.xlane.xlu0 %186 }
  0xd0   :  { %2493 = vst [vmem:[#allocation13_spill] sm:$0xff] %v1744_v51  ;;  %v1796_v57 = vmul.f32 %v1744_v51, %v1744_v51  ;;  %v1807_v51 = vmul.f32 %v1772_v61, %v1772_v61  ;;  %2510 = vst [vmem:[#allocation27_spill] sm:$0xff] %v1816_v45 }
  0xd1   :  { %v1681_v4 = vpop.xlane.xlu1 %198 }
  0xd3   :  { %v1696_v38 = vpop.xlane.xlu0 %194 }
  0xd5   :  { %v286_v1 = vpop.xlane.xlu1 %285 }
  0xd6   :  { %v411_v34 = vmul.f32 0.0026041667, %v286_v1 }
  0xd7   :  { %v1737_v47 = vpop.xlane.xlu0 %206 }
  0xd8   :  { %v461_v7 = vsub.f32 %v411_v34, %v1597_v52  ;;  %v2506_v34 = vld [vmem:[#allocation49_spill] sm:$0xff] }
  0xd9   :  { %v294_v28 = vpop.xlane.xlu1 %293 }
  0xda   :  { %v486_v1 = vmax.f32 %v461_v7, 0.0  ;;  %v413_v55 = vmul.f32 0.0026041667, %v294_v28 }
  0xdb   :  { %v290_v59 = vpop.xlane.xlu0 %289 }
  0xdc   :  { %v412_v6 = vmul.f32 0.0026041667, %v290_v59  ;;  %v511_v7 = vadd.f32 1e-06, %v486_v1  ;;  %v463_v28 = vsub.f32 %v413_v55, %v1577_v54 }
  0xdd   :  { %v302_v60 = vpop.xlane.xlu1 %301 }
  0xde   :  { %v462_v59 = vsub.f32 %v412_v6, %v1619_v26  ;;  %991 = vrsqrt.f32 %v511_v7  ;;  %v488_v1 = vmax.f32 %v463_v28, 0.0  ;;  %v415_v33 = vmul.f32 0.0026041667, %v302_v60 }
  0xdf   :  { %v298_v55 = vpop.xlane.xlu0 %297  ;;  %v1811_v7 = vmul.f32 %v1785_v40, %v1785_v40 }
  0xe0   :  { %v487_v48 = vmax.f32 %v462_v59, 0.0  ;;  %v414_v6 = vmul.f32 0.0026041667, %v298_v55  ;;  %v513_v26 = vadd.f32 1e-06, %v488_v1  ;;  %v465_v50 = vsub.f32 %v415_v33, %v1651_v8 }
  0xe1   :  { %v310_v1 = vpop.xlane.xlu1 %309  ;;  %v1820_v8 = vmul.f32 0.0026041667, %v1647_v19 }
  0xe2   :  { %v512_v52 = vadd.f32 1e-06, %v487_v48  ;;  %v464_v59 = vsub.f32 %v414_v6, %v1609_v32  ;;  %993 = vrsqrt.f32 %v513_v26  ;;  %v490_v33 = vmax.f32 %v465_v50, 0.0 }
  0xe3   :  { %2511 = vst [vmem:[#allocation52_spill] sm:$0xff] %v1820_v8  ;;  %v417_v55 = vmul.f32 0.0026041667, %v310_v1  ;;  %v306_v56 = vpop.xlane.xlu0 %305  ;;  %v1827_v48 = vmul.f32 0.0026041667, %v1696_v38  ;;  %v1833_v1 = vmul.f32 %v1791_v37, %v1791_v37  ;;  %v2529_v37 = vld [vmem:[#allocation10_spill] sm:$0xff] }
  0xe4   :  { %995 = vrsqrt.f32 %v512_v52  ;;  %v489_v54 = vmax.f32 %v464_v59, 0.0  ;;  %v416_v28 = vmul.f32 0.0026041667, %v306_v56  ;;  %v515_v32 = vadd.f32 1e-06, %v490_v33 }
  0xe5   :  { %2514 = vst [vmem:[#allocation49_spill] sm:$0xff] %v1827_v48  ;;  %v467_v19 = vsub.f32 %v417_v55, %v1673_v53  ;;  %v318_v26 = vpop.xlane.xlu1 %317  ;;  %v1837_v52 = vmul.f32 %v1816_v45, %v1816_v45  ;;  %v1841_v33 = vmul.f32 %v1820_v8, %v1820_v8  ;;  %v1844_v53 = vmul.f32 0.0026041667, %v1681_v4 }
  0xe6   :  { %v514_v6 = vadd.f32 1e-06, %v489_v54  ;;  %v466_v50 = vsub.f32 %v416_v28, %v1629_v9  ;;  %997 = vrsqrt.f32 %v515_v32  ;;  %v419_v59 = vmul.f32 0.0026041667, %v318_v26  ;;  %v2518_v26 = vld [vmem:[#allocation53_spill] sm:$0xff] }
  0xe7   :  { %2515 = vst [vmem:[#allocation68_spill] sm:$0xff] %v1837_v52  ;;  %v492_v56 = vmax.f32 %v467_v19, 0.0  ;;  %v314_v38 = vpop.xlane.xlu0 %313  ;;  %2516 = vst [vmem:[#allocation69_spill] sm:$0xff] %v1844_v53  ;;  %v1847_v55 = vmul.f32 0.0026041667, %v1737_v47  ;;  %v1852_v19 = vmul.f32 %v1827_v48, %v1827_v48  ;;  %v2520_v48 = vsub.f32 %v2478_v62, %v1547_v36  ;;  %v2523_v62 = vld [vmem:[#allocation58_spill] sm:$0xff] }
  0xe8   :  { %999 = vrsqrt.f32 %v514_v6  ;;  %v491_v9 = vmax.f32 %v466_v50, 0.0  ;;  %v418_v54 = vmul.f32 0.0026041667, %v314_v38  ;;  %v992_v28 = vpop.eup %991  ;;  %v469_v32 = vsub.f32 %v419_v59, %v1707_v27 }
  0xe9   :  { %v517_v60 = vadd.f32 1e-06, %v492_v56  ;;  %2517 = vst [vmem:[#allocation70_spill] sm:$0xff] %v1852_v19  ;;  %v654_v11 = vmul.f32 %v992_v28, %v2518_v26  ;;  %v655_v45 = vmul.f32 %v992_v28, %v1555_v63  ;;  %v656_v4 = vmul.f32 %v992_v28, %v1557_v13  ;;  %v326_v50 = vpop.xlane.xlu1 %325 }
  0xea   :  { %v516_v6 = vadd.f32 1e-06, %v491_v9  ;;  %v494_v38 = vmax.f32 %v469_v32, 0.0  ;;  %v468_v47 = vsub.f32 %v418_v54, %v1662_v3  ;;  %v1858_v8 = vmul.f32 0.0026041667, %v326_v50 }
  0xeb   :  { %1001 = vrsqrt.f32 %v517_v60  ;;  %v322_v56 = vpop.xlane.xlu0 %321  ;;  %v2519_v27 = vsub.f32 %v2477_v21, %v1547_v36  ;;  %v730_v52 = vmul.f32 %v655_v45, %v2520_v48  ;;  %v2521_v28 = vsub.f32 %v2479_v14, %v1547_v36  ;;  %v2522_v21 = vld [vmem:[#allocation57_spill] sm:$0xff] }
  0xec   :  { %1003 = vrsqrt.f32 %v516_v6  ;;  %v994_v60 = vpop.eup %993  ;;  %v519_v32 = vadd.f32 1e-06, %v494_v38  ;;  %v493_v53 = vmax.f32 %v468_v47, 0.0  ;;  %v1871_v54 = vmul.f32 0.0026041667, %v322_v56  ;;  %v2524_v47 = vld [vmem:[#allocation8_spill] sm:$0xff] }
  0xed   :  { %v729_v59 = vmul.f32 %v654_v11, %v2519_v27  ;;  %v731_v9 = vmul.f32 %v656_v4, %v2521_v28  ;;  %v821_v27 = vadd.f32 %v1565_v17, %v730_v52  ;;  %v660_v48 = vmul.f32 %v994_v60, %v2518_v26  ;;  %v1877_v36 = vpop.xlane.xlu1 %333  ;;  %v2525_v56 = vld [vmem:[#allocation61_spill] sm:$0xff] }
  0xee   :  { %v996_v50 = vpop.eup %995  ;;  %v661_v14 = vmul.f32 %v994_v60, %v1555_v63  ;;  %v662_v4 = vmul.f32 %v994_v60, %v1557_v13  ;;  %v2526_v52 = vsub.f32 %v2524_v47, %v2525_v56  ;;  %1005 = vrsqrt.f32 %v519_v32 }
  0xef   :  { %v820_v11 = vadd.f32 %v2522_v21, %v729_v59  ;;  %v822_v45 = vadd.f32 %v2523_v62, %v731_v9  ;;  %v657_v6 = vmul.f32 %v996_v50, %v2518_v26  ;;  %v658_v38 = vmul.f32 %v996_v50, %v1555_v63  ;;  %896 = vst [vmem:[#allocation5 + $0x8] sm:$0xff] %v821_v27  ;;  %v1887_v3 = vpop.xlane.xlu0 %329 }
  0xf0   :  { %v735_v59 = vmul.f32 %v660_v48, %v2526_v52  ;;  %v659_v28 = vmul.f32 %v996_v50, %v1557_v13  ;;  %v518_v9 = vadd.f32 1e-06, %v493_v53  ;;  %v998_v19 = vpop.eup %997  ;;  %v2528_v60 = vsub.f32 %v2527_v18, %v2525_v56 }
  0xf1   :  { %895 = vst [vmem:[#allocation5] sm:$0xff] %v820_v11  ;;  %897 = vst [vmem:[#allocation5 + $0x10] sm:$0xff] %v822_v45  ;;  %v2530_v11 = vsub.f32 %v2529_v37, %v2525_v56  ;;  %v2531_v45 = vsub.f32 %v2480_v42, %v1559_v46  ;;  %v2532_v50 = vsub.f32 %v2482_v5, %v1559_v46 }
  0xf2   :  { %v736_v40 = vmul.f32 %v661_v14, %v2528_v60  ;;  %v1000_v53 = vpop.eup %999  ;;  %v826_v48 = vadd.f32 %v2522_v21, %v735_v59  ;;  %v2533_v52 = vsub.f32 %v1175_v15, %v1559_v46  ;;  %v666_v14 = vmul.f32 %v998_v19, %v2518_v26 }
  0xf3   :  { %v737_v27 = vmul.f32 %v662_v4, %v2530_v11  ;;  %v732_v47 = vmul.f32 %v657_v6, %v2531_v45  ;;  %v733_v32 = vmul.f32 %v658_v38, %v2532_v50  ;;  %v667_v37 = vmul.f32 %v998_v19, %v1555_v63 }
  0xf4   :  { %v734_v18 = vmul.f32 %v659_v28, %v2533_v52  ;;  %v827_v4 = vadd.f32 %v1565_v17, %v736_v40  ;;  %901 = vst [vmem:[#allocation5 + $0x30] sm:$0xff] %v826_v48  ;;  %v668_v56 = vmul.f32 %v998_v19, %v1557_v13  ;;  %v2534_v15 = vsub.f32 %v1187_v22, %v1591_v2  ;;  %v1919_v40 = vpop.xlane.xlu1 %341  ;;  %v1930_v48 = vpop.xlane.xlu0 %337  ;;  %v2537_v52 = vld [vmem:[#allocation14_spill] sm:$0xff] }
  0xf5   :  { %v828_v42 = vadd.f32 %v2523_v62, %v737_v27  ;;  %v823_v6 = vadd.f32 %v2522_v21, %v732_v47  ;;  %v824_v5 = vadd.f32 %v1565_v17, %v733_v32  ;;  %v2535_v59 = vsub.f32 %v1189_v23, %v1591_v2  ;;  %v1002_v60 = vpop.eup %1001 }
  0xf6   :  { %v825_v38 = vadd.f32 %v2523_v62, %v734_v18  ;;  %v741_v46 = vmul.f32 %v666_v14, %v2534_v15  ;;  %902 = vst [vmem:[#allocation5 + $0x38] sm:$0xff] %v827_v4  ;;  %v663_v11 = vmul.f32 %v1000_v53, %v2518_v26  ;;  %v664_v27 = vmul.f32 %v1000_v53, %v1555_v63  ;;  %v1004_v22 = vpop.eup %1003  ;;  %v2538_v18 = vld [vmem:[#allocation62_spill] sm:$0xff] }
  0xf7   :  { %v742_v28 = vmul.f32 %v667_v37, %v2535_v59  ;;  %903 = vst [vmem:[#allocation5 + $0x40] sm:$0xff] %v828_v42  ;;  %898 = vst [vmem:[#allocation5 + $0x18] sm:$0xff] %v823_v6  ;;  %v665_v19 = vmul.f32 %v1000_v53, %v1557_v13  ;;  %1007 = vrsqrt.f32 %v518_v9  ;;  %v2536_v23 = vsub.f32 %v1200_v29, %v1591_v2  ;;  %v2540_v53 = vld [vmem:[#allocation15_spill] sm:$0xff]  ;;  %v2542_v42 = vld [vmem:[#allocation16_spill] sm:$0xff] }
  0xf8   :  { %899 = vst [vmem:[#allocation5 + $0x20] sm:$0xff] %v824_v5  ;;  %900 = vst [vmem:[#allocation5 + $0x28] sm:$0xff] %v825_v38  ;;  %v832_v47 = vadd.f32 %v2522_v21, %v741_v46  ;;  %v672_v32 = vmul.f32 %v1002_v60, %v2518_v26  ;;  %v2539_v14 = vsub.f32 %v2537_v52, %v2538_v18  ;;  %v2547_v52 = vld [vmem:[#allocation19_spill] sm:$0xff] }
  0xf9   :  { %v743_v45 = vmul.f32 %v668_v56, %v2536_v23  ;;  %v833_v50 = vadd.f32 %v1565_v17, %v742_v28  ;;  %v2541_v9 = vsub.f32 %v2540_v53, %v2538_v18  ;;  %v2543_v2 = vsub.f32 %v2542_v42, %v2538_v18  ;;  %v1006_v23 = vpop.eup %1005  ;;  %v2549_v53 = vld [vmem:[#allocation20_spill] sm:$0xff] }
  0xfa   :  { %v738_v37 = vmul.f32 %v663_v11, %v2539_v14  ;;  %v673_v6 = vmul.f32 %v1002_v60, %v1555_v63  ;;  %907 = vst [vmem:[#allocation5 + $0x60] sm:$0xff] %v832_v47  ;;  %v674_v38 = vmul.f32 %v1002_v60, %v1557_v13  ;;  %v2544_v56 = vsub.f32 %v1202_v30, %v1615_v24 }
  0xfb   :  { %v739_v4 = vmul.f32 %v664_v27, %v2541_v9  ;;  %v740_v29 = vmul.f32 %v665_v19, %v2543_v2  ;;  %v834_v5 = vadd.f32 %v2523_v62, %v743_v45  ;;  %908 = vst [vmem:[#allocation5 + $0x68] sm:$0xff] %v833_v50  ;;  %v669_v46 = vmul.f32 %v1004_v22, %v2518_v26 }
  0xfc   :  { %v747_v15 = vmul.f32 %v672_v32, %v2544_v56  ;;  %v829_v59 = vadd.f32 %v2522_v21, %v738_v37  ;;  %v2545_v27 = vsub.f32 %v1204_v31, %v1615_v24  ;;  %v2546_v60 = vsub.f32 %v1218_v39, %v1615_v24  ;;  %v1960_v32 = vpop.xlane.xlu1 %349 }
  0xfd   :  { %v830_v28 = vadd.f32 %v1565_v17, %v739_v4  ;;  %v831_v11 = vadd.f32 %v2523_v62, %v740_v29  ;;  %909 = vst [vmem:[#allocation5 + $0x70] sm:$0xff] %v834_v5  ;;  %v670_v47 = vmul.f32 %v1004_v22, %v1555_v63  ;;  %v671_v50 = vmul.f32 %v1004_v22, %v1557_v13  ;;  %v2551_v4 = vld [vmem:[#allocation21_spill] sm:$0xff] }
  0xfe   :  { %v748_v19 = vmul.f32 %v673_v6, %v2545_v27  ;;  %v749_v45 = vmul.f32 %v674_v38, %v2546_v60  ;;  %v838_v30 = vadd.f32 %v2522_v21, %v747_v15  ;;  %904 = vst [vmem:[#allocation5 + $0x48] sm:$0xff] %v829_v59  ;;  %v2548_v18 = vsub.f32 %v2547_v52, %v1585_v12  ;;  %v346_v6 = vpop.xlane.xlu0 %345 }
  0xff   :  { %905 = vst [vmem:[#allocation5 + $0x50] sm:$0xff] %v830_v28  ;;  %906 = vst [vmem:[#allocation5 + $0x58] sm:$0xff] %v831_v11  ;;  %v678_v39 = vmul.f32 %v1006_v23, %v2518_v26  ;;  %v679_v24 = vmul.f32 %v1006_v23, %v1555_v63  ;;  %v2550_v22 = vsub.f32 %v2549_v53, %v1585_v12 }
 0x100   :  { %v839_v31 = vadd.f32 %v1565_v17, %v748_v19  ;;  %v744_v14 = vmul.f32 %v669_v46, %v2548_v18  ;;  %v840_v37 = vadd.f32 %v2523_v62, %v749_v45  ;;  %913 = vst [vmem:[#allocation5 + $0x90] sm:$0xff] %v838_v30  ;;  %v2552_v42 = vsub.f32 %v2551_v4, %v1585_v12 }
 0x101   :  { %v745_v9 = vmul.f32 %v670_v47, %v2550_v22  ;;  %v680_v29 = vmul.f32 %v1006_v23, %v1557_v13  ;;  %v2553_v38 = vsub.f32 %v2486_v43, %v1645_v25  ;;  %v2554_v15 = vsub.f32 %v1222_v41, %v1645_v25  ;;  %v1008_v23 = vpop.eup %1007 }
 0x102   :  { %v746_v2 = vmul.f32 %v671_v50, %v2552_v42  ;;  %914 = vst [vmem:[#allocation5 + $0x98] sm:$0xff] %v839_v31  ;;  %v835_v5 = vadd.f32 %v2522_v21, %v744_v14  ;;  %v2555_v59 = vsub.f32 %v1858_v8, %v1729_v44  ;;  %915 = vst [vmem:[#allocation5 + $0xa0] sm:$0xff] %v840_v37  ;;  %v423_v8 = vmul.f32 0.0026041667, %v1877_v36  ;;  %v2557_v36 = vld [vmem:[#allocation22_spill] sm:$0xff]  ;;  %v2558_v31 = vld [vmem:[#allocation59_spill] sm:$0xff]  ;;  %v354_v4 = vpop.xlane.xlu0 %353 }
 0x103   :  { %v753_v56 = vmul.f32 %v678_v39, %v2553_v38  ;;  %v754_v46 = vmul.f32 %v679_v24, %v2554_v15  ;;  %v836_v12 = vadd.f32 %v1565_v17, %v745_v9  ;;  %v2556_v27 = vsub.f32 %v1236_v49, %v1645_v25  ;;  %v2560_v14 = vld [vmem:[#allocation23_spill] sm:$0xff]  ;;  %v2562_v37 = vld [vmem:[#allocation24_spill] sm:$0xff] }
 0x104   :  { %v496_v28 = vmax.f32 %v2555_v59, 0.0  ;;  %v837_v11 = vadd.f32 %v2523_v62, %v746_v2  ;;  %v470_v43 = vsub.f32 %v1871_v54, %v1685_v10  ;;  %910 = vst [vmem:[#allocation5 + $0x78] sm:$0xff] %v835_v5  ;;  %v675_v30 = vmul.f32 %v1008_v23, %v2518_v26  ;;  %v358_v10 = vpop.xlane.xlu1 %357 }
 0x105   :  { %v755_v19 = vmul.f32 %v680_v29, %v2556_v27  ;;  %v844_v41 = vadd.f32 %v2522_v21, %v753_v56  ;;  %v845_v60 = vadd.f32 %v1565_v17, %v754_v46  ;;  %911 = vst [vmem:[#allocation5 + $0x80] sm:$0xff] %v836_v12  ;;  %v676_v25 = vmul.f32 %v1008_v23, %v1555_v63 }
 0x106   :  { %v521_v44 = vadd.f32 1e-06, %v496_v28  ;;  %912 = vst [vmem:[#allocation5 + $0x88] sm:$0xff] %v837_v11  ;;  %v677_v49 = vmul.f32 %v1008_v23, %v1557_v13  ;;  %v495_v54 = vmax.f32 %v470_v43, 0.0  ;;  %v473_v47 = vsub.f32 %v423_v8, %v1757_v16 }
 0x107   :  { %v846_v45 = vadd.f32 %v2523_v62, %v755_v19  ;;  %919 = vst [vmem:[#allocation5 + $0xc0] sm:$0xff] %v844_v41  ;;  %920 = vst [vmem:[#allocation5 + $0xc8] sm:$0xff] %v845_v60  ;;  %v422_v50 = vmul.f32 0.0026041667, %v1887_v3  ;;  %v2559_v52 = vsub.f32 %v2557_v36, %v2558_v31  ;;  %v2561_v39 = vsub.f32 %v2560_v14, %v2558_v31  ;;  %v362_v41 = vpop.xlane.xlu0 %361 }
 0x108   :  { %1009 = vrsqrt.f32 %v521_v44  ;;  %v2563_v53 = vsub.f32 %v2562_v37, %v2558_v31  ;;  %v425_v9 = vmul.f32 0.0026041667, %v1919_v40  ;;  %v520_v42 = vadd.f32 1e-06, %v495_v54  ;;  %v366_v28 = vpop.xlane.xlu1 %365  ;;  %v2569_v37 = vld [vmem:[#allocation36_spill] sm:$0xff] }
 0x109   :  { %921 = vst [vmem:[#allocation5 + $0xd0] sm:$0xff] %v846_v45  ;;  %v750_v18 = vmul.f32 %v675_v30, %v2559_v52  ;;  %v751_v24 = vmul.f32 %v676_v25, %v2561_v39  ;;  %v498_v16 = vmax.f32 %v473_v47, 0.0  ;;  %v472_v3 = vsub.f32 %v422_v50, %v1718_v35  ;;  %v2564_v52 = vld [vmem:[#allocation31_spill] sm:$0xff]  ;;  %v2567_v39 = vld [vmem:[#allocation32_spill] sm:$0xff] }
 0x10a   :  { %v752_v22 = vmul.f32 %v677_v49, %v2563_v53  ;;  %v424_v2 = vmul.f32 0.0026041667, %v1930_v48  ;;  %v475_v56 = vsub.f32 %v425_v9, %v1780_v0  ;;  %1011 = vrsqrt.f32 %v520_v42 }
 0x10b   :  { %v841_v29 = vadd.f32 %v2522_v21, %v750_v18  ;;  %v842_v5 = vadd.f32 %v1565_v17, %v751_v24  ;;  %v523_v15 = vadd.f32 1e-06, %v498_v16  ;;  %v497_v46 = vmax.f32 %v472_v3, 0.0  ;;  %v2565_v18 = vld [vmem:[#allocation63_spill] sm:$0xff] }
 0x10c   :  { %v843_v38 = vadd.f32 %v2523_v62, %v752_v22  ;;  %v474_v40 = vsub.f32 %v424_v2, %v1748_v20  ;;  %v500_v59 = vmax.f32 %v475_v56, 0.0  ;;  %v427_v35 = vmul.f32 0.0026041667, %v1960_v32 }
 0x10d   :  { %916 = vst [vmem:[#allocation5 + $0xa8] sm:$0xff] %v841_v29  ;;  %917 = vst [vmem:[#allocation5 + $0xb0] sm:$0xff] %v842_v5  ;;  %v426_v48 = vmul.f32 0.0026041667, %v346_v6  ;;  %v2022_v12 = vmul.f32 %v1847_v55, %v1847_v55  ;;  %1013 = vrsqrt.f32 %v523_v15  ;;  %v522_v11 = vadd.f32 1e-06, %v497_v46 }
 0x10e   :  { %918 = vst [vmem:[#allocation5 + $0xb8] sm:$0xff] %v843_v38  ;;  %v499_v0 = vmax.f32 %v474_v40, 0.0  ;;  %v429_v27 = vmul.f32 0.0026041667, %v358_v10  ;;  %v525_v19 = vadd.f32 1e-06, %v500_v59  ;;  %v477_v43 = vsub.f32 %v427_v35, %v1807_v51 }
 0x10f   :  { %v476_v20 = vsub.f32 %v426_v48, %v1767_v58  ;;  %v428_v23 = vmul.f32 0.0026041667, %v354_v4  ;;  %1015 = vrsqrt.f32 %v522_v11  ;;  %v431_v6 = vmul.f32 0.0026041667, %v366_v28  ;;  %v2571_v40 = vld [vmem:[#allocation25_spill] sm:$0xff] }
 0x110   :  { %v524_v60 = vadd.f32 1e-06, %v499_v0  ;;  %v479_v32 = vsub.f32 %v429_v27, %v1833_v1  ;;  %1017 = vrsqrt.f32 %v525_v19  ;;  %v502_v44 = vmax.f32 %v477_v43, 0.0  ;;  %v2574_v27 = vld [vmem:[#allocation26_spill] sm:$0xff] }
 0x111   :  { %v501_v8 = vmax.f32 %v476_v20, 0.0  ;;  %v478_v45 = vsub.f32 %v428_v23, %v1796_v57  ;;  %v481_v49 = vsub.f32 %v431_v6, %v1841_v33  ;;  %v430_v51 = vmul.f32 0.0026041667, %v362_v41  ;;  %v2576_v20 = vld [vmem:[#allocation28_spill] sm:$0xff] }
 0x112   :  { %v1010_v30 = vpop.eup %1009  ;;  %1019 = vrsqrt.f32 %v524_v60  ;;  %v504_v25 = vmax.f32 %v479_v32, 0.0  ;;  %v527_v47 = vadd.f32 1e-06, %v502_v44  ;;  %v2566_v57 = vsub.f32 %v2564_v52, %v2565_v18  ;;  %v2578_v44 = vld [vmem:[#allocation37_spill] sm:$0xff] }
 0x113   :  { %v684_v58 = vmul.f32 %v1010_v30, %v2518_v26  ;;  %v685_v10 = vmul.f32 %v1010_v30, %v1555_v63  ;;  %v686_v54 = vmul.f32 %v1010_v30, %v1557_v13  ;;  %v526_v1 = vadd.f32 1e-06, %v501_v8  ;;  %v2579_v8 = vld [vmem:[#allocation65_spill] sm:$0xff] }
 0x114   :  { %v529_v50 = vadd.f32 1e-06, %v504_v25  ;;  %v503_v36 = vmax.f32 %v478_v45, 0.0  ;;  %v506_v31 = vmax.f32 %v481_v49, 0.0  ;;  %v2568_v24 = vsub.f32 %v2567_v39, %v2565_v18  ;;  %v1012_v9 = vpop.eup %1011  ;;  %v2581_v25 = vld [vmem:[#allocation38_spill] sm:$0xff]  ;;  %v2585_v39 = vld [vmem:[#allocation29_spill] sm:$0xff] }
 0x115   :  { %v759_v14 = vmul.f32 %v684_v58, %v2566_v57  ;;  %v2570_v53 = vsub.f32 %v2569_v37, %v2565_v18  ;;  %1021 = vrsqrt.f32 %v527_v47  ;;  %v480_v16 = vsub.f32 %v430_v51, %v1811_v7  ;;  %v2572_v7 = vld [vmem:[#allocation66_spill] sm:$0xff] }
 0x116   :  { %v760_v33 = vmul.f32 %v685_v10, %v2568_v24  ;;  %1023 = vrsqrt.f32 %v526_v1  ;;  %v528_v4 = vadd.f32 1e-06, %v503_v36  ;;  %v2041_v42 = vadd.f32 1e-06, %v506_v31  ;;  %v2583_v58 = vld [vmem:[#allocation42_spill] sm:$0xff]  ;;  %v2586_v24 = vld [vmem:[#allocation67_spill] sm:$0xff] }
 0x117   :  { %v761_v22 = vmul.f32 %v686_v54, %v2570_v53  ;;  %v850_v3 = vadd.f32 %v2522_v21, %v759_v14  ;;  %v681_v5 = vmul.f32 %v1012_v9, %v2518_v26  ;;  %v1014_v38 = vpop.eup %1013  ;;  %v682_v56 = vmul.f32 %v1012_v9, %v1555_v63  ;;  %v2588_v53 = vld [vmem:[#allocation30_spill] sm:$0xff] }
 0x118   :  { %v851_v2 = vadd.f32 %v1565_v17, %v760_v33  ;;  %v683_v15 = vmul.f32 %v1012_v9, %v1557_v13  ;;  %1025 = vrsqrt.f32 %v529_v50  ;;  %v505_v46 = vmax.f32 %v480_v16, 0.0 }
 0x119   :  { %v852_v29 = vadd.f32 %v2523_v62, %v761_v22  ;;  %925 = vst [vmem:[#allocation5 + $0xf0] sm:$0xff] %v850_v3  ;;  %v2573_v59 = vsub.f32 %v2571_v40, %v2572_v7  ;;  %v690_v48 = vmul.f32 %v1014_v38, %v2518_v26  ;;  %v691_v28 = vmul.f32 %v1014_v38, %v1555_v63  ;;  %v1016_v0 = vpop.eup %1015 }
 0x11a   :  { %926 = vst [vmem:[#allocation5 + $0xf8] sm:$0xff] %v851_v2  ;;  %v692_v11 = vmul.f32 %v1014_v38, %v1557_v13  ;;  %v2575_v19 = vsub.f32 %v2574_v27, %v2572_v7  ;;  %v2577_v23 = vsub.f32 %v2576_v20, %v2572_v7  ;;  %1027 = vrsqrt.f32 %v528_v4  ;;  %v1018_v32 = vpop.eup %1017  ;;  %v2590_v2 = vld [vmem:[#allocation33_spill] sm:$0xff] }
 0x11b   :  { %927 = vst [vmem:[#allocation5 + $0x100] sm:$0xff] %v852_v29  ;;  %v756_v35 = vmul.f32 %v681_v5, %v2573_v59  ;;  %v2062_v60 = vadd.f32 1e-06, %v505_v46  ;;  %v2580_v45 = vsub.f32 %v2578_v44, %v2579_v8  ;;  %v2582_v49 = vsub.f32 %v2581_v25, %v2579_v8  ;;  %v2592_v59 = vld [vmem:[#allocation43_spill] sm:$0xff] }
 0x11c   :  { %v757_v43 = vmul.f32 %v682_v56, %v2575_v19  ;;  %v758_v41 = vmul.f32 %v683_v15, %v2577_v23  ;;  %v2584_v10 = vsub.f32 %v2583_v58, %v2579_v8  ;;  %v1020_v47 = vpop.eup %1019  ;;  %v687_v36 = vmul.f32 %v1016_v0, %v2518_v26 }
 0x11d   :  { %v847_v6 = vadd.f32 %v2522_v21, %v756_v35  ;;  %v765_v30 = vmul.f32 %v690_v48, %v2580_v45  ;;  %v766_v51 = vmul.f32 %v691_v28, %v2582_v49  ;;  %v688_v31 = vmul.f32 %v1016_v0, %v1555_v63  ;;  %v2593_v35 = vld [vmem:[#allocation12_spill] sm:$0xff]  ;;  %v2602_v49 = vld [vmem:[#allocation35_spill] sm:$0xff] }
 0x11e   :  { %v767_v54 = vmul.f32 %v692_v11, %v2584_v10  ;;  %v848_v1 = vadd.f32 %v1565_v17, %v757_v43  ;;  %v849_v50 = vadd.f32 %v2523_v62, %v758_v41  ;;  %v689_v14 = vmul.f32 %v1016_v0, %v1557_v13  ;;  %v2595_v11 = vld [vmem:[#allocation44_spill] sm:$0xff] }
 0x11f   :  { %922 = vst [vmem:[#allocation5 + $0xd8] sm:$0xff] %v847_v6  ;;  %v856_v52 = vadd.f32 %v2522_v21, %v765_v30  ;;  %v857_v18 = vadd.f32 %v1565_v17, %v766_v51  ;;  %v2587_v33 = vsub.f32 %v2585_v39, %v2586_v24  ;;  %v2589_v22 = vsub.f32 %v2588_v53, %v2586_v24  ;;  %v1022_v3 = vpop.eup %1021  ;;  %v2597_v43 = vld [vmem:[#allocation48_spill] sm:$0xff]  ;;  %v2607_v53 = vld [vmem:[#allocation50_spill] sm:$0xff] }
 0x120   :  { %v858_v57 = vadd.f32 %v2523_v62, %v767_v54  ;;  %923 = vst [vmem:[#allocation5 + $0xe0] sm:$0xff] %v848_v1  ;;  %924 = vst [vmem:[#allocation5 + $0xe8] sm:$0xff] %v849_v50  ;;  %v696_v4 = vmul.f32 %v1018_v32, %v2518_v26  ;;  %v697_v16 = vmul.f32 %v1018_v32, %v1555_v63  ;;  %v1024_v46 = vpop.eup %1023  ;;  %v2600_v6 = vld [vmem:[#allocation64_spill] sm:$0xff]  ;;  %1029 = vrsqrt.f32 %v2041_v42 }
 0x121   :  { %v762_v37 = vmul.f32 %v687_v36, %v2587_v33  ;;  %v763_v9 = vmul.f32 %v688_v31, %v2589_v22  ;;  %931 = vst [vmem:[#allocation5 + $0x120] sm:$0xff] %v856_v52  ;;  %932 = vst [vmem:[#allocation5 + $0x128] sm:$0xff] %v857_v18  ;;  %v2591_v29 = vsub.f32 %v2590_v2, %v2586_v24  ;;  %v374_v33 = vpop.xlane.xlu1 %373  ;;  %v2609_v2 = vld [vmem:[#allocation54_spill] sm:$0xff]  ;;  %1031 = vrsqrt.f32 %v2062_v60 }
 0x122   :  { %933 = vst [vmem:[#allocation5 + $0x130] sm:$0xff] %v858_v57  ;;  %v698_v38 = vmul.f32 %v1018_v32, %v1557_v13  ;;  %v693_v56 = vmul.f32 %v1020_v47, %v2518_v26  ;;  %v694_v15 = vmul.f32 %v1020_v47, %v1555_v63  ;;  %v2594_v48 = vsub.f32 %v2592_v59, %v2593_v35  ;;  %v2599_v32 = vld [vmem:[#allocation34_spill] sm:$0xff]  ;;  %v1026_v45 = vpop.eup %1025 }
 0x123   :  { %v764_v5 = vmul.f32 %v689_v14, %v2591_v29  ;;  %v853_v40 = vadd.f32 %v2522_v21, %v762_v37  ;;  %v854_v7 = vadd.f32 %v1565_v17, %v763_v9  ;;  %v2596_v0 = vsub.f32 %v2595_v11, %v2593_v35 }
 0x124   :  { %v771_v28 = vmul.f32 %v696_v4, %v2594_v48  ;;  %v2598_v20 = vsub.f32 %v2597_v43, %v2593_v35  ;;  %v695_v41 = vmul.f32 %v1020_v47, %v1557_v13  ;;  %v2601_v44 = vsub.f32 %v2599_v32, %v2600_v6  ;;  %v2604_v47 = vld [vmem:[#allocation39_spill] sm:$0xff]  ;;  %v1028_v52 = vpop.eup %1027  ;;  %v2614_v35 = vld [vmem:[#allocation41_spill] sm:$0xff] }
 0x125   :  { %v772_v27 = vmul.f32 %v697_v16, %v2596_v0  ;;  %v855_v19 = vadd.f32 %v2523_v62, %v764_v5  ;;  %928 = vst [vmem:[#allocation5 + $0x108] sm:$0xff] %v853_v40  ;;  %929 = vst [vmem:[#allocation5 + $0x110] sm:$0xff] %v854_v7  ;;  %v2603_v51 = vsub.f32 %v2602_v49, %v2600_v6 }
 0x126   :  { %v773_v23 = vmul.f32 %v698_v38, %v2598_v20  ;;  %v768_v8 = vmul.f32 %v693_v56, %v2601_v44  ;;  %v862_v30 = vadd.f32 %v2522_v21, %v771_v28  ;;  %v702_v10 = vmul.f32 %v1022_v3, %v2518_v26  ;;  %v2611_v38 = vld [vmem:[#allocation40_spill] sm:$0xff]  ;;  %v2612_v56 = vld [vmem:[#allocation11_spill] sm:$0xff]  ;;  %v2616_v28 = vld [vmem:[#allocation45_spill] sm:$0xff] }
 0x127   :  { %v863_v25 = vadd.f32 %v1565_v17, %v772_v27  ;;  %v769_v58 = vmul.f32 %v694_v15, %v2603_v51  ;;  %930 = vst [vmem:[#allocation5 + $0x118] sm:$0xff] %v855_v19  ;;  %v2605_v1 = vsub.f32 %v2604_v47, %v2600_v6  ;;  %v703_v31 = vmul.f32 %v1022_v3, %v1555_v63  ;;  %v2618_v20 = vld [vmem:[#allocation55_spill] sm:$0xff]  ;;  %v2623_v51 = vld [vmem:[#allocation60_spill] sm:$0xff] }
 0x128   :  { %v864_v54 = vadd.f32 %v2523_v62, %v773_v23  ;;  %v859_v36 = vadd.f32 %v2522_v21, %v768_v8  ;;  %937 = vst [vmem:[#allocation5 + $0x150] sm:$0xff] %v862_v30  ;;  %v704_v57 = vmul.f32 %v1022_v3, %v1557_v13  ;;  %v2606_v14 = vsub.f32 %v2506_v34, %v1772_v61  ;;  %v370_v3 = vpop.xlane.xlu0 %369  ;;  %v2619_v23 = vld [vmem:[#allocation18_spill] sm:$0xff]  ;;  %v2621_v8 = vld [vmem:[#allocation56_spill] sm:$0xff] }
 0x129   :  { %v770_v50 = vmul.f32 %v695_v41, %v2605_v1  ;;  %938 = vst [vmem:[#allocation5 + $0x158] sm:$0xff] %v863_v25  ;;  %v860_v18 = vadd.f32 %v1565_v17, %v769_v58  ;;  %v699_v24 = vmul.f32 %v1024_v46, %v2518_v26  ;;  %v2608_v22 = vsub.f32 %v2607_v53, %v1772_v61  ;;  %v385_v1 = vpop.xlane.xlu1 %384 }
 0x12a   :  { %v777_v39 = vmul.f32 %v702_v10, %v2606_v14  ;;  %939 = vst [vmem:[#allocation5 + $0x160] sm:$0xff] %v864_v54  ;;  %934 = vst [vmem:[#allocation5 + $0x138] sm:$0xff] %v859_v36  ;;  %v700_v4 = vmul.f32 %v1024_v46, %v1555_v63  ;;  %v701_v16 = vmul.f32 %v1024_v46, %v1557_v13  ;;  %v2625_v36 = vld [vmem:[#allocation46_spill] sm:$0xff]  ;;  %v433_v14 = vmul.f32 0.0026041667, %v374_v33 }
 0x12b   :  { %v861_v37 = vadd.f32 %v2523_v62, %v770_v50  ;;  %v778_v9 = vmul.f32 %v703_v31, %v2608_v22  ;;  %935 = vst [vmem:[#allocation5 + $0x140] sm:$0xff] %v860_v18  ;;  %v2610_v34 = vsub.f32 %v2609_v2, %v1772_v61  ;;  %v2613_v15 = vsub.f32 %v2611_v38, %v2612_v56  ;;  %v2626_v31 = vld [vmem:[#allocation13_spill] sm:$0xff]  ;;  %v2630_v22 = vld [vmem:[#allocation51_spill] sm:$0xff]  ;;  %v2632_v2 = vld [vmem:[#allocation70_spill] sm:$0xff] }
 0x12c   :  { %v868_v5 = vadd.f32 %v2522_v21, %v777_v39  ;;  %v708_v7 = vmul.f32 %v1026_v45, %v2518_v26  ;;  %v2615_v46 = vsub.f32 %v2614_v35, %v2612_v56  ;;  %v2617_v11 = vsub.f32 %v2616_v28, %v2612_v56  ;;  %v378_v39 = vpop.xlane.xlu0 %377  ;;  %v2633_v38 = vld [vmem:[#allocation69_spill] sm:$0xff] }
 0x12d   :  { %v779_v29 = vmul.f32 %v704_v57, %v2610_v34  ;;  %v774_v40 = vmul.f32 %v699_v24, %v2613_v15  ;;  %936 = vst [vmem:[#allocation5 + $0x148] sm:$0xff] %v861_v37  ;;  %v869_v59 = vadd.f32 %v1565_v17, %v778_v9  ;;  %v709_v0 = vmul.f32 %v1026_v45, %v1555_v63  ;;  %v2628_v37 = vld [vmem:[#allocation47_spill] sm:$0xff] }
 0x12e   :  { %v775_v48 = vmul.f32 %v700_v4, %v2615_v46  ;;  %v776_v61 = vmul.f32 %v701_v16, %v2617_v11  ;;  %943 = vst [vmem:[#allocation5 + $0x180] sm:$0xff] %v868_v5  ;;  %v710_v43 = vmul.f32 %v1026_v45, %v1557_v13  ;;  %v2620_v41 = vsub.f32 %v2618_v20, %v2619_v23 }
 0x12f   :  { %v870_v27 = vadd.f32 %v2523_v62, %v779_v29  ;;  %v865_v19 = vadd.f32 %v2522_v21, %v774_v40  ;;  %944 = vst [vmem:[#allocation5 + $0x188] sm:$0xff] %v869_v59  ;;  %v2622_v30 = vsub.f32 %v2621_v8, %v2619_v23  ;;  %v705_v49 = vmul.f32 %v1028_v52, %v2518_v26 }
 0x130   :  { %v783_v32 = vmul.f32 %v708_v7, %v2620_v41  ;;  %v866_v6 = vadd.f32 %v1565_v17, %v775_v48  ;;  %v867_v44 = vadd.f32 %v2523_v62, %v776_v61  ;;  %v2624_v45 = vsub.f32 %v2623_v51, %v2619_v23  ;;  %v2634_v7 = vld [vmem:[#allocation68_spill] sm:$0xff]  ;;  %v1043_v23 = vld [vmem:[#allocation2 + $0x1d8] sm:$0xff] }
 0x131   :  { %v784_v25 = vmul.f32 %v709_v0, %v2622_v30  ;;  %945 = vst [vmem:[#allocation5 + $0x190] sm:$0xff] %v870_v27  ;;  %940 = vst [vmem:[#allocation5 + $0x168] sm:$0xff] %v865_v19  ;;  %v706_v54 = vmul.f32 %v1028_v52, %v1555_v63  ;;  %v707_v47 = vmul.f32 %v1028_v52, %v1557_v13  ;;  %v432_v33 = vmul.f32 0.0026041667, %v370_v3  ;;  %v1041_v0 = vld [vmem:[#allocation2 + $0x1c8] sm:$0xff]  ;;  %v2635_v27 = vld [vmem:[#allocation17_spill] sm:$0xff] }
 0x132   :  { %v785_v58 = vmul.f32 %v710_v43, %v2624_v45  ;;  %v874_v10 = vadd.f32 %v2522_v21, %v783_v32  ;;  %941 = vst [vmem:[#allocation5 + $0x170] sm:$0xff] %v866_v6  ;;  %942 = vst [vmem:[#allocation5 + $0x178] sm:$0xff] %v867_v44  ;;  %v2627_v18 = vsub.f32 %v2625_v36, %v2626_v31  ;;  %v435_v34 = vmul.f32 0.0026041667, %v385_v1  ;;  %v1042_v43 = vld [vmem:[#allocation2 + $0x1d0] sm:$0xff]  ;;  %v1030_v32 = vpop.eup %1029  ;;  %v1044_v6 = vld [vmem:[#allocation2 + $0x1e0] sm:$0xff] }
 0x133   :  { %v875_v50 = vadd.f32 %v1565_v17, %v784_v25  ;;  %v2629_v53 = vsub.f32 %v2628_v37, %v2626_v31  ;;  %v2631_v9 = vsub.f32 %v2630_v22, %v2626_v31  ;;  %v483_v42 = vsub.f32 %v433_v14, %v2632_v2  ;;  %v2636_v44 = vld [vmem:[#allocation52_spill] sm:$0xff]  ;;  %v1045_v30 = vld [vmem:[#allocation2 + $0x1e8] sm:$0xff]  ;;  %v1032_v45 = vpop.eup %1031 }
 0x134   :  { %v780_v57 = vmul.f32 %v705_v49, %v2627_v18  ;;  %v876_v24 = vadd.f32 %v2523_v62, %v785_v58  ;;  %949 = vst [vmem:[#allocation5 + $0x1b0] sm:$0xff] %v874_v10  ;;  %v459_v56 = vmul.f32 %v2633_v38, %v2633_v38  ;;  %v434_v15 = vmul.f32 0.0026041667, %v378_v39  ;;  %v1046_v49 = vld [vmem:[#allocation2 + $0x1f0] sm:$0xff] }
 0x135   :  { %v781_v52 = vmul.f32 %v706_v54, %v2629_v53  ;;  %v782_v4 = vmul.f32 %v707_v47, %v2631_v9  ;;  %950 = vst [vmem:[#allocation5 + $0x1b8] sm:$0xff] %v875_v50  ;;  %v508_v40 = vmax.f32 %v483_v42, 0.0  ;;  %v482_v60 = vsub.f32 %v432_v33, %v2634_v7  ;;  %v1048_v42 = vld [vmem:[#allocation2 + $0x200] sm:$0xff] }
 0x136   :  { %v871_v16 = vadd.f32 %v2522_v21, %v780_v57  ;;  %951 = vst [vmem:[#allocation5 + $0x1c0] sm:$0xff] %v876_v24  ;;  %v485_v59 = vsub.f32 %v435_v34, %v2022_v12  ;;  %v484_v35 = vsub.f32 %v434_v15, %v459_v56  ;;  %v620_v19 = vsub.f32 %v1041_v0, %v2635_v27  ;;  %v1049_v34 = vld [vmem:[#allocation2 + $0x208] sm:$0xff] }
 0x137   :  { %v872_v29 = vadd.f32 %v1565_v17, %v781_v52  ;;  %v873_v5 = vadd.f32 %v2523_v62, %v782_v4  ;;  %v533_v3 = vadd.f32 1e-06, %v508_v40  ;;  %v507_v46 = vmax.f32 %v482_v60, 0.0  ;;  %v1047_v4 = vld [vmem:[#allocation2 + $0x1f8] sm:$0xff]  ;;  %v1050_v56 = vld [vmem:[#allocation2 + $0x228] sm:$0xff]  ;;  %v1051_v40 = vld [vmem:[#allocation2 + $0x230] sm:$0xff] }
 0x138   :  { %946 = vst [vmem:[#allocation5 + $0x198] sm:$0xff] %v871_v16  ;;  %v510_v48 = vmax.f32 %v485_v59, 0.0  ;;  %v509_v28 = vmax.f32 %v484_v35, 0.0  ;;  %v621_v20 = vsub.f32 %v1042_v43, %v2635_v27  ;;  %v622_v41 = vsub.f32 %v1043_v23, %v2635_v27  ;;  %v2637_v16 = vld [vmem:[#allocation27_spill] sm:$0xff]  ;;  %v1052_v60 = vld [vmem:[#allocation2 + $0x210] sm:$0xff]  ;;  %v2638_v59 = vld [vmem:[#allocation49_spill] sm:$0xff] }
 0x139   :  { %947 = vst [vmem:[#allocation5 + $0x1a0] sm:$0xff] %v872_v29  ;;  %948 = vst [vmem:[#allocation5 + $0x1a8] sm:$0xff] %v873_v5  ;;  %1033 = vrsqrt.f32 %v533_v3  ;;  %v532_v11 = vadd.f32 1e-06, %v507_v46  ;;  %v623_v8 = vsub.f32 %v1044_v6, %v2636_v44  ;;  %v624_v25 = vsub.f32 %v1045_v30, %v2636_v44  ;;  %v1053_v3 = vld [vmem:[#allocation2 + $0x218] sm:$0xff] }
 0x13a   :  { %v535_v61 = vadd.f32 1e-06, %v510_v48  ;;  %v534_v12 = vadd.f32 1e-06, %v509_v28  ;;  %v625_v51 = vsub.f32 %v1046_v49, %v2636_v44  ;;  %v714_v58 = vmul.f32 %v1030_v32, %v2518_v26  ;;  %v1054_v48 = vld [vmem:[#allocation2 + $0x220] sm:$0xff] }
 0x13b   :  { %1035 = vrsqrt.f32 %v532_v11  ;;  %v715_v10 = vmul.f32 %v1030_v32, %v1555_v63  ;;  %v716_v54 = vmul.f32 %v1030_v32, %v1557_v13  ;;  %v711_v47 = vmul.f32 %v1032_v45, %v2518_v26  ;;  %v1058_v32 = vld [vmem:[#allocation2 + $0x250] sm:$0xf] }
 0x13c   :  { %1037 = vrsqrt.f32 %v535_v61  ;;  %v712_v1 = vmul.f32 %v1032_v45, %v1555_v63  ;;  %v713_v50 = vmul.f32 %v1032_v45, %v1557_v13  ;;  %v789_v36 = vmul.f32 %v714_v58, %v623_v8 }
 0x13d   :  { %1039 = vrsqrt.f32 %v534_v12  ;;  %v790_v31 = vmul.f32 %v715_v10, %v624_v25  ;;  %v791_v18 = vmul.f32 %v716_v54, %v625_v51  ;;  %v786_v57 = vmul.f32 %v711_v47, %v620_v19  ;;  %v1055_v19 = vld [vmem:[#allocation2 + $0x238] sm:$0xff] }
 0x13e   :  { %v787_v14 = vmul.f32 %v712_v1, %v621_v20  ;;  %v788_v39 = vmul.f32 %v713_v50, %v622_v41  ;;  %v880_v24 = vadd.f32 %v2522_v21, %v789_v36  ;;  %v626_v2 = vsub.f32 %v1047_v4, %v2637_v16  ;;  %v1056_v20 = vld [vmem:[#allocation2 + $0x240] sm:$0xf]  ;;  %v1057_v41 = vld [vmem:[#allocation2 + $0x248] sm:$0xf] }
 0x13f   :  { %v881_v37 = vadd.f32 %v1565_v17, %v790_v31  ;;  %v882_v53 = vadd.f32 %v2523_v62, %v791_v18  ;;  %v877_v52 = vadd.f32 %v2522_v21, %v786_v57  ;;  %v627_v33 = vsub.f32 %v1048_v42, %v2637_v16 }
 0x140   :  { %v878_v22 = vadd.f32 %v1565_v17, %v787_v14  ;;  %v879_v9 = vadd.f32 %v2523_v62, %v788_v39  ;;  %v628_v29 = vsub.f32 %v1049_v34, %v2637_v16  ;;  %955 = vst [vmem:[#allocation5 + $0x1e0] sm:$0xff] %v880_v24  ;;  %v632_v15 = vsub.f32 %v1050_v56, %v2633_v38 }
 0x141   :  { %956 = vst [vmem:[#allocation5 + $0x1e8] sm:$0xff] %v881_v37  ;;  %957 = vst [vmem:[#allocation5 + $0x1f0] sm:$0xff] %v882_v53  ;;  %v633_v7 = vsub.f32 %v1051_v40, %v2633_v38  ;;  %v629_v35 = vsub.f32 %v1052_v60, %v2638_v59  ;;  %v630_v46 = vsub.f32 %v1053_v3, %v2638_v59 }
 0x142   :  { %952 = vst [vmem:[#allocation5 + $0x1c8] sm:$0xff] %v877_v52  ;;  %953 = vst [vmem:[#allocation5 + $0x1d0] sm:$0xff] %v878_v22  ;;  %v631_v28 = vsub.f32 %v1054_v48, %v2638_v59  ;;  %v634_v43 = vsub.f32 %v1055_v19, %v2633_v38  ;;  %v635_v23 = vsub.f32 %v1056_v20, %v1847_v55 }
 0x143   :  { %v1034_v5 = vpop.eup %1033  ;;  %954 = vst [vmem:[#allocation5 + $0x1d8] sm:$0xff] %v879_v9  ;;  %v636_v12 = vsub.f32 %v1057_v41, %v1847_v55  ;;  %v637_v6 = vsub.f32 %v1058_v32, %v1847_v55 }
 0x144   :  { %v720_v11 = vmul.f32 %v1034_v5, %v2518_v26  ;;  %v721_v61 = vmul.f32 %v1034_v5, %v1555_v63  ;;  %v722_v0 = vmul.f32 %v1034_v5, %v1557_v13 }
 0x145   :  { %v1036_v27 = vpop.eup %1035 }
 0x146   :  { %v1038_v44 = vpop.eup %1037  ;;  %v795_v8 = vmul.f32 %v720_v11, %v629_v35  ;;  %v796_v30 = vmul.f32 %v721_v61, %v630_v46  ;;  %v797_v25 = vmul.f32 %v722_v0, %v631_v28  ;;  %v717_v49 = vmul.f32 %v1036_v27, %v2518_v26 }
 0x147   :  { %v1040_v51 = vpop.eup %1039  ;;  %v718_v45 = vmul.f32 %v1036_v27, %v1555_v63  ;;  %v719_v38 = vmul.f32 %v1036_v27, %v1557_v13  ;;  %v726_v58 = vmul.f32 %v1038_v44, %v2518_v26  ;;  %v727_v10 = vmul.f32 %v1038_v44, %v1555_v63 }
 0x148   :  { %v886_v54 = vadd.f32 %v2522_v21, %v795_v8  ;;  %v887_v47 = vadd.f32 %v1565_v17, %v796_v30  ;;  %v888_v55 = vadd.f32 %v2523_v62, %v797_v25  ;;  %v792_v1 = vmul.f32 %v717_v49, %v626_v2 }
 0x149   :  { %v793_v50 = vmul.f32 %v718_v45, %v627_v33  ;;  %v794_v36 = vmul.f32 %v719_v38, %v628_v29  ;;  %v728_v31 = vmul.f32 %v1038_v44, %v1557_v13  ;;  %v801_v18 = vmul.f32 %v726_v58, %v635_v23 }
 0x14a   :  { %961 = vst [vmem:[#allocation5 + $0x210] sm:$0xff] %v886_v54  ;;  %962 = vst [vmem:[#allocation5 + $0x218] sm:$0xff] %v887_v47  ;;  %v883_v57 = vadd.f32 %v2522_v21, %v792_v1  ;;  %v802_v14 = vmul.f32 %v727_v10, %v636_v12  ;;  %v723_v39 = vmul.f32 %v1040_v51, %v2518_v26 }
 0x14b   :  { %963 = vst [vmem:[#allocation5 + $0x220] sm:$0xff] %v888_v55  ;;  %v724_v24 = vmul.f32 %v1040_v51, %v1555_v63  ;;  %v884_v37 = vadd.f32 %v1565_v17, %v793_v50  ;;  %v885_v53 = vadd.f32 %v2523_v62, %v794_v36  ;;  %v803_v52 = vmul.f32 %v728_v31, %v637_v6 }
 0x14c   :  { %v892_v22 = vadd.f32 %v2522_v21, %v801_v18  ;;  %958 = vst [vmem:[#allocation5 + $0x1f8] sm:$0xff] %v883_v57  ;;  %v893_v9 = vadd.f32 %v1565_v17, %v802_v14  ;;  %v725_v4 = vmul.f32 %v1040_v51, %v1557_v13  ;;  %v798_v16 = vmul.f32 %v723_v39, %v632_v15 }
 0x14d   :  { %v799_v2 = vmul.f32 %v724_v24, %v633_v7  ;;  %959 = vst [vmem:[#allocation5 + $0x200] sm:$0xff] %v884_v37  ;;  %960 = vst [vmem:[#allocation5 + $0x208] sm:$0xff] %v885_v53  ;;  %v894_v26 = vadd.f32 %v2523_v62, %v803_v52 }
 0x14e   :  { %967 = vst [vmem:[#allocation5 + $0x240] sm:$0xf] %v892_v22  ;;  %968 = vst [vmem:[#allocation5 + $0x248] sm:$0xf] %v893_v9  ;;  %v800_v63 = vmul.f32 %v725_v4, %v634_v43  ;;  %v889_v42 = vadd.f32 %v2522_v21, %v798_v16 }
 0x14f   :  { %v890_v33 = vadd.f32 %v1565_v17, %v799_v2  ;;  %969 = vst [vmem:[#allocation5 + $0x250] sm:$0xf] %v894_v26 }
 0x150   :  { %v891_v34 = vadd.f32 %v2523_v62, %v800_v63  ;;  %964 = vst [vmem:[#allocation5 + $0x228] sm:$0xff] %v889_v42 }
 0x151   :  { %965 = vst [vmem:[#allocation5 + $0x230] sm:$0xff] %v890_v33 }
 0x152   :  { %966 = vst [vmem:[#allocation5 + $0x238] sm:$0xff] %v891_v34 }
 0x153   :  { %1092 = shalt.err (!%p1089_p12)
}
 0x154   :  { %s1093_s5 = scalar_lea.hbm %s2263_s3, 9600 }
 0x155   :  { %p1094_p13 = scmp.ne.s32.totalorder %s2263_s3, %s1093_s5  ;;  %p1097_p0 = scmp.lt.u32.totalorder %s1093_s5, %s2263_s3 }
 0x157   :  { %p1099_p1 = pnand %p1097_p0, %p1094_p13 }
 0x159   :  { %1102 = shalt.err (!%p1099_p1)
}
 0x15a   :  { %981 = dma.vmem_to_hbm [thread:$0]  %s976_s2, 9600, %s2263_s3, [#allocation4], %s1108_s22, %s1108_s22, %s1109_s23  }
 0x15b   :  { %1105 = dma.done.wait [#allocation4], 9600  }
 0x15c   :  { %1106 = vsyncadd [#allocation4], 4294957696 }
 0x15d   :  { %985 = vsyncpa [#allocation3], 1 }
 0x15e   :  { %986 = vsyncpa [#allocation4], 1 }

</bundles_post_ra>
